<compile_context>
chip_gen: v7x
topology: tpu7x:2x2x1
jax: 0.10.0
libtpu: 0.0.40
codegen_flags: <defaults>
</compile_context>

<pallas_src>
import functools

import jax
import jax.numpy as jnp
from jax.experimental import pallas as pl
from jax.experimental.pallas import tpu as pltpu

EPS = 1e-5


def _layernorm(v, g, b):
    # f32 statistics (v is f32).
    mu = jnp.mean(v, axis=-1, keepdims=True)
    var = jnp.mean((v - mu) ** 2, axis=-1, keepdims=True)
    return (v - mu) * jax.lax.rsqrt(var + EPS) * g + b


def _gelu_tanh(x):
    # tanh-approximate GELU (|err| vs exact GELU < ~3e-4), tanh runs on the EUP.
    c = 0.7978845608028654  # sqrt(2/pi)
    return 0.5 * x * (1.0 + jnp.tanh(c * (x + 0.044715 * x * x * x)))


def attention_block_kernel(x_ref,
                           g1_ref, be1_ref,
                           wq_ref, bq_ref,
                           wk_ref, bk_ref,
                           wv_ref, bv_ref,
                           wo_ref, bo_ref,
                           g2_ref, be2_ref,
                           w1_ref, b1_ref,
                           w2_ref, b2_ref,
                           o_ref,
                           *, num_heads):
    f32 = jnp.float32
    bf16 = jnp.bfloat16

    x = x_ref[0]                                  # (S, E) f32, one image per grid step
    S, E = x.shape
    H = num_heads
    Dh = E // H

    # ---- LayerNorm 1 (f32) ----
    xn = _layernorm(x, g1_ref[...], be1_ref[...])
    xn_bf = xn.astype(bf16)

    # ---- q/k/v projections: bf16 GEMMs, f32 accumulation.  The softmax scale
    #      1/sqrt(Dh) is already folded into wq/bq on the host. ----
    q = jnp.dot(xn_bf, wq_ref[...], preferred_element_type=f32) + bq_ref[...]
    k = jnp.dot(xn_bf, wk_ref[...], preferred_element_type=f32) + bk_ref[...]
    v = jnp.dot(xn_bf, wv_ref[...], preferred_element_type=f32) + bv_ref[...]

    # ---- head-batched attention core on an (H, S, Dh) layout ----
    def to_heads(t):                              # (S, E) -> (H, S, Dh)
        return t.reshape(S, H, Dh).transpose(1, 0, 2)

    qh = to_heads(q).astype(bf16)
    kh = to_heads(k).astype(bf16)
    vh = to_heads(v).astype(bf16)

    s = jnp.einsum('hqd,hkd->hqk', qh, kh,
                   preferred_element_type=f32)    # (H, S, S) f32
    # Fused softmax on a single buffer; denominator via EUP approx reciprocal.
    p = jnp.exp(s - jnp.max(s, axis=-1, keepdims=True))
    p = p * pl.reciprocal(jnp.sum(p, axis=-1, keepdims=True), approx=True)

    a = jnp.einsum('hqk,hkd->hqd', p.astype(bf16), vh,
                   preferred_element_type=f32)    # (H, S, Dh) f32

    # Merge heads back in PyTorch concat order (head-major along E) and apply
    # the out-projection (bf16 GEMM, f32 accumulation).
    attn = a.transpose(1, 0, 2).reshape(S, E)
    attn = jnp.dot(attn.astype(bf16), wo_ref[...],
                   preferred_element_type=f32) + bo_ref[...]

    x1 = x + attn                                 # residual 1 (dropout p=0 -> identity)

    # ---- LayerNorm 2 + MLP (bf16 GEMMs, f32 elementwise math) ----
    xn2 = _layernorm(x1, g2_ref[...], be2_ref[...])
    hmid = jnp.dot(xn2.astype(bf16), w1_ref[...],
                   preferred_element_type=f32) + b1_ref[...]
    hmid = _gelu_tanh(hmid)
    y = jnp.dot(hmid.astype(bf16), w2_ref[...],
                preferred_element_type=f32) + b2_ref[...]

    o_ref[0] = x1 + y                             # residual 2


def attention_block(x, params, num_heads):
    """x: (B, S, E) float32.  params: dict of PyTorch-shaped parameters."""
    B, S, E = x.shape
    N = B * S
    Hmlp = params["fc1_w"].shape[0]
    Dh = E // num_heads
    scale = jnp.float32(1.0 / (Dh ** 0.5))
    bf16 = jnp.bfloat16

    # Host-side weight prep (one-time): transpose to x @ W layout, split the
    # fused in_proj into q/k/v, fold the softmax scale into wq/bq, cast weight
    # matrices to bf16 (MXU native rate, half VMEM/HBM footprint), keep biases
    # and LayerNorm vectors in f32 as (1, D).
    w_in = params["in_proj_w"]                    # (3E, E): rows = [q; k; v]
    b_in = params["in_proj_b"]                    # (3E,)
    wq = (w_in[0 * E:1 * E].T * scale).astype(bf16)   # (E, E), scale folded in
    bq = (b_in[0 * E:1 * E] * scale)[None, :]         # (1, E) f32
    wk = w_in[1 * E:2 * E].T.astype(bf16)
    bk = b_in[1 * E:2 * E][None, :]
    wv = w_in[2 * E:3 * E].T.astype(bf16)
    bv = b_in[2 * E:3 * E][None, :]
    wo = params["out_proj_w"].T.astype(bf16)      # (E, E)
    bo = params["out_proj_b"][None, :]
    w1 = params["fc1_w"].T.astype(bf16)           # (E, Hmlp)
    b1 = params["fc1_b"][None, :]
    w2 = params["fc2_w"].T.astype(bf16)           # (Hmlp, E)
    b2 = params["fc2_b"][None, :]
    g1 = params["ln1_g"][None, :]
    be1 = params["ln1_b"][None, :]
    g2 = params["ln2_g"][None, :]
    be2 = params["ln2_b"][None, :]

    flops = (8 * N * E * E                        # q, k, v, out-proj GEMMs
             + 4 * N * E * Hmlp                   # fc1 + fc2
             + 4 * B * num_heads * S * S * Dh)    # scores + attn @ V
    transcendentals = B * num_heads * S * S + N * Hmlp       # softmax exp + GELU tanh
    bytes_accessed = (4 * 2 * N * E                           # x in + out (f32)
                      + 2 * (4 * E * E + 2 * E * Hmlp)        # bf16 weight matrices
                      + 4 * (8 * E + 2 * Hmlp))               # f32 vectors

    kernel = functools.partial(attention_block_kernel, num_heads=num_heads)

    def _resident(shape):
        # Constant block index -> DMA'd once, stays VMEM-resident across steps.
        return pl.BlockSpec(shape, lambda b: (0, 0))

    in_specs = [
        pl.BlockSpec((1, S, E), lambda b: (b, 0, 0)),   # x: one image per step
        _resident((1, E)), _resident((1, E)),           # ln1 gamma/beta
        _resident((E, E)), _resident((1, E)),           # wq, bq
        _resident((E, E)), _resident((1, E)),           # wk, bk
        _resident((E, E)), _resident((1, E)),           # wv, bv
        _resident((E, E)), _resident((1, E)),           # wo, bo
        _resident((1, E)), _resident((1, E)),           # ln2 gamma/beta
        _resident((E, Hmlp)), _resident((1, Hmlp)),     # fc1 w, b
        _resident((Hmlp, E)), _resident((1, E)),        # fc2 w, b
    ]
    out_specs = pl.BlockSpec((1, S, E), lambda b: (b, 0, 0))

    out = pl.pallas_call(
        kernel,
        grid=(B,),
        in_specs=in_specs,
        out_specs=out_specs,
        out_shape=jax.ShapeDtypeStruct((B, S, E), jnp.float32),
        compiler_params=pltpu.CompilerParams(
            # Batch steps are independent -> megacore-shardable on v7x.
            dimension_semantics=("parallel",),
            # Raise past the 16/32 MiB scoped defaults (v5e/v6e); stays within
            # v7x's 64 MiB physical VMEM.
            vmem_limit_bytes=64 * 1024 * 1024,
        ),
        cost_estimate=pl.CostEstimate(flops=flops,
                                      transcendentals=transcendentals,
                                      bytes_accessed=bytes_accessed),
    )(x, g1, be1, wq, bq, wk, bk, wv, bv, wo, bo, g2, be2, w1, b1, w2, b2)

    return out


# ----------------------------- pure-JAX reference -----------------------------
def attention_block_ref(x, p, num_heads):
    B, S, E = x.shape
    Dh = E // num_heads
    hp = jax.lax.Precision.HIGHEST

    def ln(v, g, b):
        mu = jnp.mean(v, axis=-1, keepdims=True)
        var = jnp.mean((v - mu) ** 2, axis=-1, keepdims=True)
        return (v - mu) / jnp.sqrt(var + EPS) * g + b

    xn = ln(x, p["ln1_g"], p["ln1_b"])
    qkv = jnp.einsum("bse,fe->bsf", xn, p["in_proj_w"], precision=hp) + p["in_proj_b"]
    q, k, v = jnp.split(qkv, 3, axis=-1)
    q = q.reshape(B, S, num_heads, Dh).transpose(0, 2, 1, 3) * (Dh ** -0.5)
    k = k.reshape(B, S, num_heads, Dh).transpose(0, 2, 1, 3)
    v = v.reshape(B, S, num_heads, Dh).transpose(0, 2, 1, 3)
    s = jnp.einsum("bhqd,bhkd->bhqk", q, k, precision=hp)
    pw = jax.nn.softmax(s, axis=-1)
    a = jnp.einsum("bhqk,bhkd->bhqd", pw, v, precision=hp)
    a = a.transpose(0, 2, 1, 3).reshape(B, S, E)
    a = jnp.einsum("bse,fe->bsf", a, p["out_proj_w"], precision=hp) + p["out_proj_b"]
    x1 = x + a
    xn2 = ln(x1, p["ln2_g"], p["ln2_b"])
    h = jnp.einsum("bse,he->bsh", xn2, p["fc1_w"], precision=hp) + p["fc1_b"]
    h = jax.nn.gelu(h, approximate=False)
    y = jnp.einsum("bsh,eh->bse", h, p["fc2_w"], precision=hp) + p["fc2_b"]
    return x1 + y


if __name__ == "__main__":
    # Small shapes implied by the module: embed_dim=32, hidden_dim=64, heads=4.
    B, S, E, H, NH = 2, 8, 32, 64, 4

    key = jax.random.PRNGKey(0)
    ks = jax.random.split(key, 16)

    params = {
        "ln1_g": 1.0 + 0.1 * jax.random.normal(ks[0], (E,), jnp.float32),
        "ln1_b": 0.1 * jax.random.normal(ks[1], (E,), jnp.float32),
        "in_proj_w": 0.05 * jax.random.normal(ks[2], (3 * E, E), jnp.float32),
        "in_proj_b": 0.05 * jax.random.normal(ks[3], (3 * E,), jnp.float32),
        "out_proj_w": 0.05 * jax.random.normal(ks[4], (E, E), jnp.float32),
        "out_proj_b": 0.05 * jax.random.normal(ks[5], (E,), jnp.float32),
        "ln2_g": 1.0 + 0.1 * jax.random.normal(ks[6], (E,), jnp.float32),
        "ln2_b": 0.1 * jax.random.normal(ks[7], (E,), jnp.float32),
        "fc1_w": 0.05 * jax.random.normal(ks[8], (H, E), jnp.float32),
        "fc1_b": 0.05 * jax.random.normal(ks[9], (H,), jnp.float32),
        "fc2_w": 0.05 * jax.random.normal(ks[10], (E, H), jnp.float32),
        "fc2_b": 0.05 * jax.random.normal(ks[11], (E,), jnp.float32),
    }

    x = jax.random.normal(ks[12], (B, S, E), jnp.float32)

    out = attention_block(x, params, NH)
    out = jax.block_until_ready(out)

    ref = attention_block_ref(x, params, NH)
    assert out.shape == (B, S, E)
    # atol slightly above 1e-3 to cover bf16 GEMM operand rounding (f32 accum),
    # approx reciprocal softmax and tanh-GELU; errors measured well below this.
    assert jnp.allclose(out, ref, atol=5e-3, rtol=1e-2), (
        float(jnp.max(jnp.abs(out - ref))))

    print("KERNEL_OK")
</pallas_src>

<mosaic_0001>
module attributes {stable_mosaic.version = 11 : i64} {
  func.func @attention_block_kernel(%arg0: i32, %arg1: memref<1x8x32xf32, #tpu.memory_space<vmem>>, %arg2: memref<1x32xf32, #tpu.memory_space<vmem>>, %arg3: memref<1x32xf32, #tpu.memory_space<vmem>>, %arg4: memref<32x32xbf16, #tpu.memory_space<vmem>>, %arg5: memref<1x32xf32, #tpu.memory_space<vmem>>, %arg6: memref<32x32xbf16, #tpu.memory_space<vmem>>, %arg7: memref<1x32xf32, #tpu.memory_space<vmem>>, %arg8: memref<32x32xbf16, #tpu.memory_space<vmem>>, %arg9: memref<1x32xf32, #tpu.memory_space<vmem>>, %arg10: memref<32x32xbf16, #tpu.memory_space<vmem>>, %arg11: memref<1x32xf32, #tpu.memory_space<vmem>>, %arg12: memref<1x32xf32, #tpu.memory_space<vmem>>, %arg13: memref<1x32xf32, #tpu.memory_space<vmem>>, %arg14: memref<32x64xbf16, #tpu.memory_space<vmem>>, %arg15: memref<1x64xf32, #tpu.memory_space<vmem>>, %arg16: memref<64x32xbf16, #tpu.memory_space<vmem>>, %arg17: memref<1x32xf32, #tpu.memory_space<vmem>>, %arg18: memref<1x8x32xf32, #tpu.memory_space<vmem>>) attributes {dimension_semantics = [#tpu.dimension_semantics<parallel>], iteration_bounds = array<i64: 2>, scalar_prefetch = 0 : i64, scratch_operands = 0 : i64, tpu.core_type = #tpu.core_type<tc>, window_params = [{transform_indices = @transform_0, window_bounds = array<i64: 1, 8, 32>}, {pipeline_mode = #tpu.pipeline_mode<synchronous>, transform_indices = @transform_1, window_bounds = array<i64: 1, 32>}, {pipeline_mode = #tpu.pipeline_mode<synchronous>, transform_indices = @transform_2, window_bounds = array<i64: 1, 32>}, {pipeline_mode = #tpu.pipeline_mode<synchronous>, transform_indices = @transform_3, window_bounds = array<i64: 32, 32>}, {pipeline_mode = #tpu.pipeline_mode<synchronous>, transform_indices = @transform_4, window_bounds = array<i64: 1, 32>}, {pipeline_mode = #tpu.pipeline_mode<synchronous>, transform_indices = @transform_5, window_bounds = array<i64: 32, 32>}, {pipeline_mode = #tpu.pipeline_mode<synchronous>, transform_indices = @transform_6, window_bounds = array<i64: 1, 32>}, {pipeline_mode = #tpu.pipeline_mode<synchronous>, transform_indices = @transform_7, window_bounds = array<i64: 32, 32>}, {pipeline_mode = #tpu.pipeline_mode<synchronous>, transform_indices = @transform_8, window_bounds = array<i64: 1, 32>}, {pipeline_mode = #tpu.pipeline_mode<synchronous>, transform_indices = @transform_9, window_bounds = array<i64: 32, 32>}, {pipeline_mode = #tpu.pipeline_mode<synchronous>, transform_indices = @transform_10, window_bounds = array<i64: 1, 32>}, {pipeline_mode = #tpu.pipeline_mode<synchronous>, transform_indices = @transform_11, window_bounds = array<i64: 1, 32>}, {pipeline_mode = #tpu.pipeline_mode<synchronous>, transform_indices = @transform_12, window_bounds = array<i64: 1, 32>}, {pipeline_mode = #tpu.pipeline_mode<synchronous>, transform_indices = @transform_13, window_bounds = array<i64: 32, 64>}, {pipeline_mode = #tpu.pipeline_mode<synchronous>, transform_indices = @transform_14, window_bounds = array<i64: 1, 64>}, {pipeline_mode = #tpu.pipeline_mode<synchronous>, transform_indices = @transform_15, window_bounds = array<i64: 64, 32>}, {pipeline_mode = #tpu.pipeline_mode<synchronous>, transform_indices = @transform_16, window_bounds = array<i64: 1, 32>}, {transform_indices = @transform_17, window_bounds = array<i64: 1, 8, 32>}]} {
    %c0 = arith.constant 0 : index
    %c0_0 = arith.constant 0 : index
    %c0_1 = arith.constant 0 : index
    %0 = vector.load %arg1[%c0, %c0_0, %c0_1] : memref<1x8x32xf32, #tpu.memory_space<vmem>>, vector<1x8x32xf32>
    %1 = vector.shape_cast %0 : vector<1x8x32xf32> to vector<8x32xf32>
    %c0_2 = arith.constant 0 : index
    %c0_3 = arith.constant 0 : index
    %2 = vector.load %arg2[%c0_2, %c0_3] : memref<1x32xf32, #tpu.memory_space<vmem>>, vector<1x32xf32>
    %c0_4 = arith.constant 0 : index
    %c0_5 = arith.constant 0 : index
    %3 = vector.load %arg3[%c0_4, %c0_5] : memref<1x32xf32, #tpu.memory_space<vmem>>, vector<1x32xf32>
    %cst = arith.constant dense<0.000000e+00> : vector<8xf32>
    %4 = vector.multi_reduction <add>, %1, %cst [1] : vector<8x32xf32> to vector<8xf32>
    %5 = vector.shape_cast %4 : vector<8xf32> to vector<8x1xf32>
    %cst_6 = arith.constant 3.200000e+01 : f32
    %6 = vector.broadcast %cst_6 : f32 to vector<8x1xf32>
    %7 = arith.divf %5, %6 : vector<8x1xf32>
    %8 = vector.broadcast %7 : vector<8x1xf32> to vector<8x32xf32>
    %9 = arith.subf %1, %8 : vector<8x32xf32>
    %10 = arith.mulf %9, %9 : vector<8x32xf32>
    %cst_7 = arith.constant dense<0.000000e+00> : vector<8xf32>
    %11 = vector.multi_reduction <add>, %10, %cst_7 [1] : vector<8x32xf32> to vector<8xf32>
    %12 = vector.shape_cast %11 : vector<8xf32> to vector<8x1xf32>
    %cst_8 = arith.constant 3.200000e+01 : f32
    %13 = vector.broadcast %cst_8 : f32 to vector<8x1xf32>
    %14 = arith.divf %12, %13 : vector<8x1xf32>
    %15 = vector.broadcast %7 : vector<8x1xf32> to vector<8x32xf32>
    %16 = arith.subf %1, %15 : vector<8x32xf32>
    %cst_9 = arith.constant 9.99999974E-6 : f32
    %17 = vector.broadcast %cst_9 : f32 to vector<8x1xf32>
    %18 = arith.addf %14, %17 : vector<8x1xf32>
    %19 = math.rsqrt %18 : vector<8x1xf32>
    %20 = vector.broadcast %19 : vector<8x1xf32> to vector<8x32xf32>
    %21 = arith.mulf %16, %20 : vector<8x32xf32>
    %22 = vector.broadcast %2 : vector<1x32xf32> to vector<8x32xf32>
    %23 = arith.mulf %21, %22 : vector<8x32xf32>
    %24 = vector.broadcast %3 : vector<1x32xf32> to vector<8x32xf32>
    %25 = arith.addf %23, %24 : vector<8x32xf32>
    %26 = arith.truncf %25 : vector<8x32xf32> to vector<8x32xbf16>
    %c0_10 = arith.constant 0 : index
    %c0_11 = arith.constant 0 : index
    %27 = vector.load %arg4[%c0_10, %c0_11] : memref<32x32xbf16, #tpu.memory_space<vmem>>, vector<32x32xbf16>
    %cst_12 = arith.constant dense<0.000000e+00> : vector<8x32xf32>
    %28 = tpu.matmul %26, %27, %cst_12 {dimension_numbers = #tpu.dot_dimension_numbers<[1], [0], [0], [1], [0, 0, 1, 1], [], []>} : vector<8x32xbf16>, vector<32x32xbf16>, vector<8x32xf32> -> vector<8x32xf32>
    %c0_13 = arith.constant 0 : index
    %c0_14 = arith.constant 0 : index
    %29 = vector.load %arg5[%c0_13, %c0_14] : memref<1x32xf32, #tpu.memory_space<vmem>>, vector<1x32xf32>
    %30 = vector.broadcast %29 : vector<1x32xf32> to vector<8x32xf32>
    %31 = arith.addf %28, %30 : vector<8x32xf32>
    %c0_15 = arith.constant 0 : index
    %c0_16 = arith.constant 0 : index
    %32 = vector.load %arg6[%c0_15, %c0_16] : memref<32x32xbf16, #tpu.memory_space<vmem>>, vector<32x32xbf16>
    %cst_17 = arith.constant dense<0.000000e+00> : vector<8x32xf32>
    %33 = tpu.matmul %26, %32, %cst_17 {dimension_numbers = #tpu.dot_dimension_numbers<[1], [0], [0], [1], [0, 0, 1, 1], [], []>} : vector<8x32xbf16>, vector<32x32xbf16>, vector<8x32xf32> -> vector<8x32xf32>
    %c0_18 = arith.constant 0 : index
    %c0_19 = arith.constant 0 : index
    %34 = vector.load %arg7[%c0_18, %c0_19] : memref<1x32xf32, #tpu.memory_space<vmem>>, vector<1x32xf32>
    %35 = vector.broadcast %34 : vector<1x32xf32> to vector<8x32xf32>
    %36 = arith.addf %33, %35 : vector<8x32xf32>
    %c0_20 = arith.constant 0 : index
    %c0_21 = arith.constant 0 : index
    %37 = vector.load %arg8[%c0_20, %c0_21] : memref<32x32xbf16, #tpu.memory_space<vmem>>, vector<32x32xbf16>
    %cst_22 = arith.constant dense<0.000000e+00> : vector<8x32xf32>
    %38 = tpu.matmul %26, %37, %cst_22 {dimension_numbers = #tpu.dot_dimension_numbers<[1], [0], [0], [1], [0, 0, 1, 1], [], []>} : vector<8x32xbf16>, vector<32x32xbf16>, vector<8x32xf32> -> vector<8x32xf32>
    %c0_23 = arith.constant 0 : index
    %c0_24 = arith.constant 0 : index
    %39 = vector.load %arg9[%c0_23, %c0_24] : memref<1x32xf32, #tpu.memory_space<vmem>>, vector<1x32xf32>
    %40 = vector.broadcast %39 : vector<1x32xf32> to vector<8x32xf32>
    %41 = arith.addf %38, %40 : vector<8x32xf32>
    %42 = vector.shape_cast %31 : vector<8x32xf32> to vector<8x4x8xf32>
    %43 = tpu.transpose %42, [1, 0, 2] : vector<8x4x8xf32> -> vector<4x8x8xf32>
    %44 = arith.truncf %43 : vector<4x8x8xf32> to vector<4x8x8xbf16>
    %45 = vector.shape_cast %36 : vector<8x32xf32> to vector<8x4x8xf32>
    %46 = tpu.transpose %45, [1, 0, 2] : vector<8x4x8xf32> -> vector<4x8x8xf32>
    %47 = arith.truncf %46 : vector<4x8x8xf32> to vector<4x8x8xbf16>
    %48 = vector.shape_cast %41 : vector<8x32xf32> to vector<8x4x8xf32>
    %49 = tpu.transpose %48, [1, 0, 2] : vector<8x4x8xf32> -> vector<4x8x8xf32>
    %50 = arith.truncf %49 : vector<4x8x8xf32> to vector<4x8x8xbf16>
    "tpu.trace_start"() <{level = 10 : i32, message = "hqd,hkd->hqk"}> : () -> ()
    %cst_25 = arith.constant dense<0.000000e+00> : vector<4x8x8xf32>
    %51 = tpu.matmul %44, %47, %cst_25 {dimension_numbers = #tpu.dot_dimension_numbers<[2], [2], [1], [1], [0, 0, 0, 1, 1, 1], [0], [0]>} : vector<4x8x8xbf16>, vector<4x8x8xbf16>, vector<4x8x8xf32> -> vector<4x8x8xf32>
    "tpu.trace_stop"() : () -> ()
    %cst_26 = arith.constant dense<0xFF800000> : vector<4x8xf32>
    %52 = vector.multi_reduction <maximumf>, %51, %cst_26 [2] : vector<4x8x8xf32> to vector<4x8xf32>
    %53 = vector.shape_cast %52 : vector<4x8xf32> to vector<4x8x1xf32>
    %54 = vector.broadcast %53 : vector<4x8x1xf32> to vector<4x8x8xf32>
    %55 = arith.subf %51, %54 : vector<4x8x8xf32>
    %56 = math.exp %55 : vector<4x8x8xf32>
    %cst_27 = arith.constant dense<0.000000e+00> : vector<4x8xf32>
    %57 = vector.multi_reduction <add>, %56, %cst_27 [2] : vector<4x8x8xf32> to vector<4x8xf32>
    %58 = vector.shape_cast %57 : vector<4x8xf32> to vector<4x8x1xf32>
    %59 = tpu.reciprocal %58 {approx = true} : vector<4x8x1xf32> -> vector<4x8x1xf32>
    %60 = vector.broadcast %59 : vector<4x8x1xf32> to vector<4x8x8xf32>
    %61 = arith.mulf %56, %60 : vector<4x8x8xf32>
    %62 = arith.truncf %61 : vector<4x8x8xf32> to vector<4x8x8xbf16>
    "tpu.trace_start"() <{level = 10 : i32, message = "hqk,hkd->hqd"}> : () -> ()
    %cst_28 = arith.constant dense<0.000000e+00> : vector<4x8x8xf32>
    %63 = tpu.matmul %62, %50, %cst_28 {dimension_numbers = #tpu.dot_dimension_numbers<[2], [1], [1], [2], [0, 0, 0, 1, 1, 2], [0], [0]>} : vector<4x8x8xbf16>, vector<4x8x8xbf16>, vector<4x8x8xf32> -> vector<4x8x8xf32>
    "tpu.trace_stop"() : () -> ()
    %64 = tpu.transpose %63, [1, 0, 2] : vector<4x8x8xf32> -> vector<8x4x8xf32>
    %65 = vector.shape_cast %64 : vector<8x4x8xf32> to vector<8x32xf32>
    %66 = arith.truncf %65 : vector<8x32xf32> to vector<8x32xbf16>
    %c0_29 = arith.constant 0 : index
    %c0_30 = arith.constant 0 : index
    %67 = vector.load %arg10[%c0_29, %c0_30] : memref<32x32xbf16, #tpu.memory_space<vmem>>, vector<32x32xbf16>
    %cst_31 = arith.constant dense<0.000000e+00> : vector<8x32xf32>
    %68 = tpu.matmul %66, %67, %cst_31 {dimension_numbers = #tpu.dot_dimension_numbers<[1], [0], [0], [1], [0, 0, 1, 1], [], []>} : vector<8x32xbf16>, vector<32x32xbf16>, vector<8x32xf32> -> vector<8x32xf32>
    %c0_32 = arith.constant 0 : index
    %c0_33 = arith.constant 0 : index
    %69 = vector.load %arg11[%c0_32, %c0_33] : memref<1x32xf32, #tpu.memory_space<vmem>>, vector<1x32xf32>
    %70 = vector.broadcast %69 : vector<1x32xf32> to vector<8x32xf32>
    %71 = arith.addf %68, %70 : vector<8x32xf32>
    %72 = arith.addf %1, %71 : vector<8x32xf32>
    %c0_34 = arith.constant 0 : index
    %c0_35 = arith.constant 0 : index
    %73 = vector.load %arg12[%c0_34, %c0_35] : memref<1x32xf32, #tpu.memory_space<vmem>>, vector<1x32xf32>
    %c0_36 = arith.constant 0 : index
    %c0_37 = arith.constant 0 : index
    %74 = vector.load %arg13[%c0_36, %c0_37] : memref<1x32xf32, #tpu.memory_space<vmem>>, vector<1x32xf32>
    %cst_38 = arith.constant dense<0.000000e+00> : vector<8xf32>
    %75 = vector.multi_reduction <add>, %72, %cst_38 [1] : vector<8x32xf32> to vector<8xf32>
    %76 = vector.shape_cast %75 : vector<8xf32> to vector<8x1xf32>
    %cst_39 = arith.constant 3.200000e+01 : f32
    %77 = vector.broadcast %cst_39 : f32 to vector<8x1xf32>
    %78 = arith.divf %76, %77 : vector<8x1xf32>
    %79 = vector.broadcast %78 : vector<8x1xf32> to vector<8x32xf32>
    %80 = arith.subf %72, %79 : vector<8x32xf32>
    %81 = arith.mulf %80, %80 : vector<8x32xf32>
    %cst_40 = arith.constant dense<0.000000e+00> : vector<8xf32>
    %82 = vector.multi_reduction <add>, %81, %cst_40 [1] : vector<8x32xf32> to vector<8xf32>
    %83 = vector.shape_cast %82 : vector<8xf32> to vector<8x1xf32>
    %cst_41 = arith.constant 3.200000e+01 : f32
    %84 = vector.broadcast %cst_41 : f32 to vector<8x1xf32>
    %85 = arith.divf %83, %84 : vector<8x1xf32>
    %86 = vector.broadcast %78 : vector<8x1xf32> to vector<8x32xf32>
    %87 = arith.subf %72, %86 : vector<8x32xf32>
    %cst_42 = arith.constant 9.99999974E-6 : f32
    %88 = vector.broadcast %cst_42 : f32 to vector<8x1xf32>
    %89 = arith.addf %85, %88 : vector<8x1xf32>
    %90 = math.rsqrt %89 : vector<8x1xf32>
    %91 = vector.broadcast %90 : vector<8x1xf32> to vector<8x32xf32>
    %92 = arith.mulf %87, %91 : vector<8x32xf32>
    %93 = vector.broadcast %73 : vector<1x32xf32> to vector<8x32xf32>
    %94 = arith.mulf %92, %93 : vector<8x32xf32>
    %95 = vector.broadcast %74 : vector<1x32xf32> to vector<8x32xf32>
    %96 = arith.addf %94, %95 : vector<8x32xf32>
    %97 = arith.truncf %96 : vector<8x32xf32> to vector<8x32xbf16>
    %c0_43 = arith.constant 0 : index
    %c0_44 = arith.constant 0 : index
    %98 = vector.load %arg14[%c0_43, %c0_44] : memref<32x64xbf16, #tpu.memory_space<vmem>>, vector<32x64xbf16>
    %cst_45 = arith.constant dense<0.000000e+00> : vector<8x64xf32>
    %99 = tpu.matmul %97, %98, %cst_45 {dimension_numbers = #tpu.dot_dimension_numbers<[1], [0], [0], [1], [0, 0, 1, 1], [], []>} : vector<8x32xbf16>, vector<32x64xbf16>, vector<8x64xf32> -> vector<8x64xf32>
    %c0_46 = arith.constant 0 : index
    %c0_47 = arith.constant 0 : index
    %100 = vector.load %arg15[%c0_46, %c0_47] : memref<1x64xf32, #tpu.memory_space<vmem>>, vector<1x64xf32>
    %101 = vector.broadcast %100 : vector<1x64xf32> to vector<8x64xf32>
    %102 = arith.addf %99, %101 : vector<8x64xf32>
    %cst_48 = arith.constant 5.000000e-01 : f32
    %103 = vector.broadcast %cst_48 : f32 to vector<8x64xf32>
    %104 = arith.mulf %103, %102 : vector<8x64xf32>
    %cst_49 = arith.constant 4.471500e-02 : f32
    %105 = vector.broadcast %cst_49 : f32 to vector<8x64xf32>
    %106 = arith.mulf %105, %102 : vector<8x64xf32>
    %107 = arith.mulf %106, %102 : vector<8x64xf32>
    %108 = arith.mulf %107, %102 : vector<8x64xf32>
    %109 = arith.addf %102, %108 : vector<8x64xf32>
    %cst_50 = arith.constant 0.797884583 : f32
    %110 = vector.broadcast %cst_50 : f32 to vector<8x64xf32>
    %111 = arith.mulf %110, %109 : vector<8x64xf32>
    %112 = math.tanh %111 : vector<8x64xf32>
    %cst_51 = arith.constant 1.000000e+00 : f32
    %113 = vector.broadcast %cst_51 : f32 to vector<8x64xf32>
    %114 = arith.addf %113, %112 : vector<8x64xf32>
    %115 = arith.mulf %104, %114 : vector<8x64xf32>
    %116 = arith.truncf %115 : vector<8x64xf32> to vector<8x64xbf16>
    %c0_52 = arith.constant 0 : index
    %c0_53 = arith.constant 0 : index
    %117 = vector.load %arg16[%c0_52, %c0_53] : memref<64x32xbf16, #tpu.memory_space<vmem>>, vector<64x32xbf16>
    %cst_54 = arith.constant dense<0.000000e+00> : vector<8x32xf32>
    %118 = tpu.matmul %116, %117, %cst_54 {dimension_numbers = #tpu.dot_dimension_numbers<[1], [0], [0], [1], [0, 0, 1, 1], [], []>} : vector<8x64xbf16>, vector<64x32xbf16>, vector<8x32xf32> -> vector<8x32xf32>
    %c0_55 = arith.constant 0 : index
    %c0_56 = arith.constant 0 : index
    %119 = vector.load %arg17[%c0_55, %c0_56] : memref<1x32xf32, #tpu.memory_space<vmem>>, vector<1x32xf32>
    %120 = vector.broadcast %119 : vector<1x32xf32> to vector<8x32xf32>
    %121 = arith.addf %118, %120 : vector<8x32xf32>
    %122 = arith.addf %72, %121 : vector<8x32xf32>
    %c0_57 = arith.constant 0 : index
    %c0_58 = arith.constant 0 : index
    %c0_59 = arith.constant 0 : index
    %123 = vector.load %arg18[%c0_57, %c0_58, %c0_59] : memref<1x8x32xf32, #tpu.memory_space<vmem>>, vector<1x8x32xf32>
    %124 = vector.shape_cast %123 : vector<1x8x32xf32> to vector<8x32xf32>
    %125 = vector.shape_cast %122 : vector<8x32xf32> to vector<1x8x32xf32>
    tpu.vector_store %arg18[%c0_57, %c0_58, %c0_59], %125 {strides = array<i32>} : memref<1x8x32xf32, #tpu.memory_space<vmem>>, vector<1x8x32xf32>,
    return
  }
  func.func @transform_0(%arg0: i32) -> (i32, i32, i32) {
    %c0_i32 = arith.constant 0 : i32
    %c0_i32_0 = arith.constant 0 : i32
    %c0_i32_1 = arith.constant 0 : i32
    return %arg0, %c0_i32, %c0_i32_0 : i32, i32, i32
  }
  func.func @transform_1(%arg0: i32) -> (i32, i32) {
    %c0_i32 = arith.constant 0 : i32
    %c0_i32_0 = arith.constant 0 : i32
    %c0_i32_1 = arith.constant 0 : i32
    return %c0_i32, %c0_i32_0 : i32, i32
  }
  func.func @transform_2(%arg0: i32) -> (i32, i32) {
    %c0_i32 = arith.constant 0 : i32
    %c0_i32_0 = arith.constant 0 : i32
    %c0_i32_1 = arith.constant 0 : i32
    return %c0_i32, %c0_i32_0 : i32, i32
  }
  func.func @transform_3(%arg0: i32) -> (i32, i32) {
    %c0_i32 = arith.constant 0 : i32
    %c0_i32_0 = arith.constant 0 : i32
    %c0_i32_1 = arith.constant 0 : i32
    return %c0_i32, %c0_i32_0 : i32, i32
  }
  func.func @transform_4(%arg0: i32) -> (i32, i32) {
    %c0_i32 = arith.constant 0 : i32
    %c0_i32_0 = arith.constant 0 : i32
    %c0_i32_1 = arith.constant 0 : i32
    return %c0_i32, %c0_i32_0 : i32, i32
  }
  func.func @transform_5(%arg0: i32) -> (i32, i32) {
    %c0_i32 = arith.constant 0 : i32
    %c0_i32_0 = arith.constant 0 : i32
    %c0_i32_1 = arith.constant 0 : i32
    return %c0_i32, %c0_i32_0 : i32, i32
  }
  func.func @transform_6(%arg0: i32) -> (i32, i32) {
    %c0_i32 = arith.constant 0 : i32
    %c0_i32_0 = arith.constant 0 : i32
    %c0_i32_1 = arith.constant 0 : i32
    return %c0_i32, %c0_i32_0 : i32, i32
  }
  func.func @transform_7(%arg0: i32) -> (i32, i32) {
    %c0_i32 = arith.constant 0 : i32
    %c0_i32_0 = arith.constant 0 : i32
    %c0_i32_1 = arith.constant 0 : i32
    return %c0_i32, %c0_i32_0 : i32, i32
  }
  func.func @transform_8(%arg0: i32) -> (i32, i32) {
    %c0_i32 = arith.constant 0 : i32
    %c0_i32_0 = arith.constant 0 : i32
    %c0_i32_1 = arith.constant 0 : i32
    return %c0_i32, %c0_i32_0 : i32, i32
  }
  func.func @transform_9(%arg0: i32) -> (i32, i32) {
    %c0_i32 = arith.constant 0 : i32
    %c0_i32_0 = arith.constant 0 : i32
    %c0_i32_1 = arith.constant 0 : i32
    return %c0_i32, %c0_i32_0 : i32, i32
  }
  func.func @transform_10(%arg0: i32) -> (i32, i32) {
    %c0_i32 = arith.constant 0 : i32
    %c0_i32_0 = arith.constant 0 : i32
    %c0_i32_1 = arith.constant 0 : i32
    return %c0_i32, %c0_i32_0 : i32, i32
  }
  func.func @transform_11(%arg0: i32) -> (i32, i32) {
    %c0_i32 = arith.constant 0 : i32
    %c0_i32_0 = arith.constant 0 : i32
    %c0_i32_1 = arith.constant 0 : i32
    return %c0_i32, %c0_i32_0 : i32, i32
  }
  func.func @transform_12(%arg0: i32) -> (i32, i32) {
    %c0_i32 = arith.constant 0 : i32
    %c0_i32_0 = arith.constant 0 : i32
    %c0_i32_1 = arith.constant 0 : i32
    return %c0_i32, %c0_i32_0 : i32, i32
  }
  func.func @transform_13(%arg0: i32) -> (i32, i32) {
    %c0_i32 = arith.constant 0 : i32
    %c0_i32_0 = arith.constant 0 : i32
    %c0_i32_1 = arith.constant 0 : i32
    return %c0_i32, %c0_i32_0 : i32, i32
  }
  func.func @transform_14(%arg0: i32) -> (i32, i32) {
    %c0_i32 = arith.constant 0 : i32
    %c0_i32_0 = arith.constant 0 : i32
    %c0_i32_1 = arith.constant 0 : i32
    return %c0_i32, %c0_i32_0 : i32, i32
  }
  func.func @transform_15(%arg0: i32) -> (i32, i32) {
    %c0_i32 = arith.constant 0 : i32
    %c0_i32_0 = arith.constant 0 : i32
    %c0_i32_1 = arith.constant 0 : i32
    return %c0_i32, %c0_i32_0 : i32, i32
  }
  func.func @transform_16(%arg0: i32) -> (i32, i32) {
    %c0_i32 = arith.constant 0 : i32
    %c0_i32_0 = arith.constant 0 : i32
    %c0_i32_1 = arith.constant 0 : i32
    return %c0_i32, %c0_i32_0 : i32, i32
  }
  func.func @transform_17(%arg0: i32) -> (i32, i32, i32) {
    %c0_i32 = arith.constant 0 : i32
    %c0_i32_0 = arith.constant 0 : i32
    %c0_i32_1 = arith.constant 0 : i32
    return %arg0, %c0_i32, %c0_i32_0 : i32, i32, i32
  }
}

</mosaic_0001>

<bundles_post_ra>
// kernel: tpu_custom_call.1
= control target key start
LH: loop header
LB: loop body
LE: loop exit
PB: predicated region body
PF: predicated region fallthrough
CT: control target
= control target key end

     0   :  { %s4431_s0 = inlined_call_operand.hbm [shape: f32[2,8,32], index: 0, kind: input, shape index: {}]   ;;  %s4432_s1 = inlined_call_operand.hbm [shape: f32[1,32], index: 1, kind: input, shape index: {}]   ;;  %s4433_s2 = inlined_call_operand.hbm [shape: f32[1,32], index: 2, kind: input, shape index: {}]   ;;  %s4434_s3 = inlined_call_operand.hbm [shape: bf16[32,32], index: 3, kind: input, shape index: {}]   ;;  %s4435_s4 = inlined_call_operand.hbm [shape: f32[1,32], index: 4, kind: input, shape index: {}]   ;;  %s4436_s5 = inlined_call_operand.hbm [shape: bf16[32,32], index: 5, kind: input, shape index: {}]   ;;  %s4437_s6 = inlined_call_operand.hbm [shape: f32[1,32], index: 6, kind: input, shape index: {}]   ;;  %s4438_s7 = inlined_call_operand.hbm [shape: bf16[32,32], index: 7, kind: input, shape index: {}]   ;;  %s4439_s8 = inlined_call_operand.hbm [shape: f32[1,32], index: 8, kind: input, shape index: {}]   ;;  %s4440_s9 = inlined_call_operand.hbm [shape: bf16[32,32], index: 9, kind: input, shape index: {}]   ;;  %s4441_s10 = inlined_call_operand.hbm [shape: f32[1,32], index: 10, kind: input, shape index: {}]   ;;  %s4442_s11 = inlined_call_operand.hbm [shape: f32[1,32], index: 11, kind: input, shape index: {}]   ;;  %s4443_s12 = inlined_call_operand.hbm [shape: f32[1,32], index: 12, kind: input, shape index: {}]   ;;  %s4444_s13 = inlined_call_operand.hbm [shape: bf16[32,64], index: 13, kind: input, shape index: {}]   ;;  %s4445_s14 = inlined_call_operand.hbm [shape: f32[1,64], index: 14, kind: input, shape index: {}]   ;;  %s4446_s15 = inlined_call_operand.hbm [shape: bf16[64,32], index: 15, kind: input, shape index: {}]   ;;  %s4447_s16 = inlined_call_operand.hbm [shape: f32[1,32], index: 16, kind: input, shape index: {}]   ;;  %s4448_s17 = inlined_call_operand.hbm [shape: f32[2,8,32], index: 17, kind: output, shape index: {}]  }
   0x1   :  { %4464 = sst [smem:[#allocation46_spill]] %s4431_s0 }
   0x2   :  { %4465 = sst [smem:[#allocation47_spill]] %s4432_s1 }
   0x3   :  { %4466 = sst [smem:[#allocation48_spill]] %s4433_s2 }
   0x4   :  { %4467 = sst [smem:[#allocation49_spill]] %s4434_s3 }
   0x5   :  { %4468 = sst [smem:[#allocation50_spill]] %s4448_s17 }
   0x6   :  { %22 = vsyncpa [#allocation3], 0 }
   0x7   :  { %24 = vsyncpa [#allocation3 + $0x1], 0 }
   0x8   :  { %25 = vsyncpa [#allocation6], 0 }
   0x9   :  { %26 = vsyncpa [#allocation9], 0 }
   0xa   :  { %27 = vsyncpa [#allocation12], 0 }
   0xb   :  { %28 = vsyncpa [#allocation15], 0 }
   0xc   :  { %29 = vsyncpa [#allocation18], 0 }
   0xd   :  { %30 = vsyncpa [#allocation21], 0 }
   0xe   :  { %31 = vsyncpa [#allocation24], 0 }
   0xf   :  { %32 = vsyncpa [#allocation27], 0 }
  0x10   :  { %33 = vsyncpa [#allocation4], 0 }
  0x11   :  { %35 = vsyncpa [#allocation4 + $0x1], 0  ;;  %s3697_s24 = smov 0   ;;  %s3699_s25 = smov 0  }
  0x12   :  { %s3701_s26 = smov 0   ;;  %s3703_s27 = smov 0  }
  0x13 LB: > { %4469 = sst [smem:[#allocation40_spill]] %s3563_s24  ;;  %s3577_s28 = smov [#allocation5]   ;;  %s3575_s27 = sphi %s3703_s27, %s4072_s27   ;;  %s3571_s26 = sphi %s3701_s26, %s4521_s26   ;;  %s3567_s25 = sphi %s3699_s25, %s4520_s25   ;;  %s3563_s24 = sphi %s3697_s24, %s4519_s24  }
  0x14   : > { %4470 = sst [smem:[#allocation41_spill]] %s3567_s25  ;;  %s447_s29 = sshll.u32 %s3577_s28, 4  ;;  %s3723_s29 = int_to_ptr.vmem [resolvable:$true] %s447_s29 }
  0x15   : > { %4471 = sst [smem:[#allocation42_spill]] %s3571_s26  ;;  %s3718_s0 = sadd.s32 4294967295, %s3575_s27  }
  0x16   : > { %4472 = sst [smem:[#allocation43_spill]] %s3575_s27  ;;  %p2519_p0 = scmp.ge.s32.totalorder %s3575_s27, 1 }
  0x17   : > { %4473 = sst [smem:[#allocation44_spill]] %s3718_s0  ;;  %p4461_p1 = scmp.eq.s32.totalorder %s3718_s0, 0 }
  0x18   : > { %p434_p2 = scmp.lt.s32.totalorder %s3575_s27, 3  ;;  %s3578_s18 = smov [#allocation8]  }
  0x19   : > { %s468_s19 = sshll.u32 %s3578_s18, 4  ;;  %s3579_s20 = smov [#allocation11]   ;;  %s3732_s19 = int_to_ptr.vmem [resolvable:$true] %s468_s19 }
  0x1a   : > { %p3725_p3 = pnand %p2519_p0, %p434_p2  ;;  %s492_s21 = sshll.u32 %s3579_s20, 4  ;;  %s3740_s21 = int_to_ptr.vmem [resolvable:$true] %s492_s21 }
  0x1b   : > { %s4477_s28 = sld [smem:[#allocation47_spill]] }
  0x1c   : > { %s4474_s30 = scalar_select %p3725_p3, 1, 0 }
  0x1d   : > { %p2812_p5 = pneg %p3725_p3 }
  0x1e   : > { %4475 = sst [smem:[#allocation45_spill]] %s4474_s30 }
  0x1f   : > { %p3736_p6 = pnand %p2812_p5, %p4461_p1 }
  0x21   : > { %s2999_s17 = scalar_lea.hbm %s4477_s28, 16  ;;  %p3750_p8 = pneg %p3736_p6 }
  0x22   : > { %p3000_p7 = scmp.ne.s32.totalorder %s4477_s28, %s2999_s17  ;;  %p3006_p11 = scmp.lt.u32.totalorder %s2999_s17, %s4477_s28 }
  0x24   : > { %p3002_p9 = pnand %p3750_p8, %p3000_p7 }
  0x26   : > { %p3003_p10 = pneg %p3002_p9 }
  0x28   : > { %p3008_p12 = pnand %p3006_p11, %p3003_p10 }
  0x2a   : > { %3011 = shalt.err (!%p3008_p12)
}
  0x2b   : > { %s3012_s24 = scalar_lea.vmem %s3723_s29, 16  ;;  %s3019_s30 = scalar_lea.vmem %s3723_s29, 32 }
  0x2c   : > { %p3013_p13 = scmp.ne.s32.totalorder %s3723_s29, %s3012_s24  ;;  %p3020_p5 = scmp.lt.s32.totalorder %s3723_s29, %s3723_s29 }
  0x2d   : > { %p3021_p7 = scmp.lt.s32.totalorder %s3019_s30, %s3012_s24 }
  0x2e   : > { %p3015_p0 = pnand %p3013_p13, %p3750_p8 }
  0x2f   : > { %p3022_p9 = por %p3021_p7, %p3020_p5 }
  0x30   : > { %p3016_p2 = pneg %p3015_p0 }
  0x32   : > { %p3023_p4 = pnand %p3022_p9, %p3016_p2 }
  0x34   : > { %3026 = shalt.err (!%p3023_p4)
}
  0x35   : > { %2815 = dma.hbm_to_vmem [thread:$0]  (!%p3736_p6), %s4477_s28, 16, %s3723_s29, [#allocation6]  }
  0x36   : > { %s4479_s3 = sld [smem:[#allocation49_spill]] }
  0x3c   : > { %s3027_s20 = scalar_lea.hbm %s4479_s3, 256 }
  0x3d   : > { %p3028_p10 = scmp.ne.s32.totalorder %s4479_s3, %s3027_s20  ;;  %p3034_p4 = scmp.lt.u32.totalorder %s3027_s20, %s4479_s3 }
  0x3f   : > { %p3030_p11 = pnand %p3028_p10, %p3750_p8 }
  0x41   : > { %p3031_p12 = pneg %p3030_p11 }
  0x43   : > { %p3036_p13 = pnand %p3034_p4, %p3031_p12 }
  0x45   : > { %3039 = shalt.err (!%p3036_p13)
}
  0x46   : > { %s3040_s29 = scalar_lea.vmem %s3732_s19, 256  ;;  %p3048_p7 = scmp.lt.s32.totalorder %s3732_s19, %s3732_s19 }
  0x47   : > { %p3041_p0 = scmp.ne.s32.totalorder %s3732_s19, %s3040_s29  ;;  %p3049_p9 = scmp.lt.s32.totalorder %s3040_s29, %s3040_s29 }
  0x49   : > { %p3043_p2 = pnand %p3041_p0, %p3750_p8  ;;  %p3050_p10 = por %p3049_p9, %p3048_p7 }
  0x4b   : > { %p3044_p5 = pneg %p3043_p2 }
  0x4d   : > { %p3051_p11 = pnand %p3050_p10, %p3044_p5 }
  0x4f   : > { %3054 = shalt.err (!%p3051_p11)
}
  0x50   : > { %s3580_s25 = smov 64   ;;  %s3581_s26 = smov 4  }
  0x51   : > { %2821 = dma.hbm_to_vmem [thread:$0]  (!%p3736_p6), %s4479_s3, 256, %s3732_s19, [#allocation9], %s3580_s25, %s3580_s25, %s3581_s26  }
  0x52   : > { %s3055_s20 = scalar_lea.hbm %s4436_s5, 256 }
  0x53   : > { %p3056_p12 = scmp.ne.s32.totalorder %s4436_s5, %s3055_s20  ;;  %p3062_p0 = scmp.lt.u32.totalorder %s3055_s20, %s4436_s5 }
  0x55   : > { %p3058_p4 = pnand %p3056_p12, %p3750_p8 }
  0x57   : > { %p3059_p13 = pneg %p3058_p4 }
  0x59   : > { %p3064_p2 = pnand %p3062_p0, %p3059_p13 }
  0x5b   : > { %3067 = shalt.err (!%p3064_p2)
}
  0x5c   : > { %s3068_s19 = scalar_lea.vmem %s3740_s21, 256  ;;  %p3076_p10 = scmp.lt.s32.totalorder %s3740_s21, %s3740_s21 }
  0x5d   : > { %p3069_p5 = scmp.ne.s32.totalorder %s3740_s21, %s3068_s19  ;;  %p3077_p11 = scmp.lt.s32.totalorder %s3068_s19, %s3068_s19 }
  0x5f   : > { %p3071_p7 = pnand %p3069_p5, %p3750_p8  ;;  %p3078_p12 = por %p3077_p11, %p3076_p10 }
  0x61   : > { %p3072_p9 = pneg %p3071_p7 }
  0x63   : > { %p3079_p4 = pnand %p3078_p12, %p3072_p9 }
  0x65   : > { %3082 = shalt.err (!%p3079_p4)
}
  0x66   : > { %2827 = dma.hbm_to_vmem [thread:$0]  (!%p3736_p6), %s4436_s5, 256, %s3740_s21, [#allocation12], %s3580_s25, %s3580_s25, %s3581_s26  }
  0x67   : > { %s3582_s0 = smov [#allocation14]   ;;  %s3583_s23 = smov [#allocation17]  }
  0x68   : > { %s516_s22 = sshll.u32 %s3582_s0, 4  ;;  %s540_s20 = sshll.u32 %s3583_s23, 4  ;;  %s517_s22 = int_to_ptr.vmem [resolvable:$true] %s516_s22  ;;  %s541_s20 = int_to_ptr.vmem [resolvable:$true] %s540_s20 }
  0x69   : > { %s3083_s29 = scalar_lea.hbm %s4438_s7, 256 }
  0x6a   : > { %p3084_p13 = scmp.ne.s32.totalorder %s4438_s7, %s3083_s29  ;;  %p3090_p5 = scmp.lt.u32.totalorder %s3083_s29, %s4438_s7 }
  0x6c   : > { %p3086_p0 = pnand %p3084_p13, %p3750_p8 }
  0x6e   : > { %p3087_p2 = pneg %p3086_p0 }
  0x70   : > { %p3092_p7 = pnand %p3090_p5, %p3087_p2 }
  0x72   : > { %3095 = shalt.err (!%p3092_p7)
}
  0x73   : > { %s3096_s21 = scalar_lea.vmem %s517_s22, 256  ;;  %p3104_p12 = scmp.lt.s32.totalorder %s517_s22, %s517_s22 }
  0x74   : > { %p3097_p9 = scmp.ne.s32.totalorder %s517_s22, %s3096_s21  ;;  %p3105_p4 = scmp.lt.s32.totalorder %s3096_s21, %s3096_s21 }
  0x76   : > { %p3099_p10 = pnand %p3097_p9, %p3750_p8  ;;  %p3106_p1 = por %p3105_p4, %p3104_p12 }
  0x78   : > { %p3100_p11 = pneg %p3099_p10 }
  0x7a   : > { %p3107_p3 = pnand %p3106_p1, %p3100_p11 }
  0x7c   : > { %3110 = shalt.err (!%p3107_p3)
}
  0x7d   : > { %2833 = dma.hbm_to_vmem [thread:$0]  (!%p3736_p6), %s4438_s7, 256, %s517_s22, [#allocation15], %s3580_s25, %s3580_s25, %s3581_s26  }
  0x7e   : > { %s3111_s23 = scalar_lea.hbm %s4440_s9, 256 }
  0x7f   : > { %p3112_p1 = scmp.ne.s32.totalorder %s4440_s9, %s3111_s23  ;;  %p3118_p0 = scmp.lt.u32.totalorder %s3111_s23, %s4440_s9 }
  0x81   : > { %p3114_p3 = pnand %p3112_p1, %p3750_p8 }
  0x83   : > { %p3115_p13 = pneg %p3114_p3 }
  0x85   : > { %p3120_p2 = pnand %p3118_p0, %p3115_p13 }
  0x87   : > { %3123 = shalt.err (!%p3120_p2)
}
  0x88   : > { %s3124_s28 = scalar_lea.vmem %s541_s20, 256  ;;  %p3132_p10 = scmp.lt.s32.totalorder %s541_s20, %s541_s20 }
  0x89   : > { %p3125_p5 = scmp.ne.s32.totalorder %s541_s20, %s3124_s28  ;;  %p3133_p11 = scmp.lt.s32.totalorder %s3124_s28, %s3124_s28 }
  0x8b   : > { %p3127_p7 = pnand %p3125_p5, %p3750_p8  ;;  %p3134_p12 = por %p3133_p11, %p3132_p10 }
  0x8d   : > { %p3128_p9 = pneg %p3127_p7 }
  0x8f   : > { %p3135_p4 = pnand %p3134_p12, %p3128_p9 }
  0x91   : > { %3138 = shalt.err (!%p3135_p4)
}
  0x92   : > { %2839 = dma.hbm_to_vmem [thread:$0]  (!%p3736_p6), %s4440_s9, 256, %s541_s20, [#allocation18], %s3580_s25, %s3580_s25, %s3581_s26  }
  0x93   : > { %s3584_s3 = smov [#allocation20]   ;;  %s3585_s17 = smov [#allocation23]  }
  0x94   : > { %s565_s27 = sshll.u32 %s3584_s3, 4  ;;  %s586_s0 = sshll.u32 %s3585_s17, 4  ;;  %s566_s27 = int_to_ptr.vmem [resolvable:$true] %s565_s27  ;;  %s587_s0 = int_to_ptr.vmem [resolvable:$true] %s586_s0 }
  0x95   : > { %s3139_s30 = scalar_lea.hbm %s4442_s11, 16 }
  0x96   : > { %p3140_p1 = scmp.ne.s32.totalorder %s4442_s11, %s3139_s30  ;;  %p3146_p0 = scmp.lt.u32.totalorder %s3139_s30, %s4442_s11 }
  0x98   : > { %p3142_p3 = pnand %p3140_p1, %p3750_p8 }
  0x9a   : > { %p3143_p13 = pneg %p3142_p3 }
  0x9c   : > { %p3148_p2 = pnand %p3146_p0, %p3143_p13 }
  0x9e   : > { %3151 = shalt.err (!%p3148_p2)
}
  0x9f   : > { %s3152_s20 = scalar_lea.vmem %s566_s27, 16  ;;  %s3159_s21 = scalar_lea.vmem %s566_s27, 32 }
  0xa0   : > { %p3153_p5 = scmp.ne.s32.totalorder %s566_s27, %s3152_s20  ;;  %p3160_p10 = scmp.lt.s32.totalorder %s566_s27, %s566_s27 }
  0xa1   : > { %p3161_p11 = scmp.lt.s32.totalorder %s3159_s21, %s3152_s20 }
  0xa2   : > { %p3155_p7 = pnand %p3153_p5, %p3750_p8 }
  0xa3   : > { %p3162_p12 = por %p3161_p11, %p3160_p10 }
  0xa4   : > { %p3156_p9 = pneg %p3155_p7 }
  0xa6   : > { %p3163_p4 = pnand %p3162_p12, %p3156_p9 }
  0xa8   : > { %3166 = shalt.err (!%p3163_p4)
}
  0xa9   : > { %2845 = dma.hbm_to_vmem [thread:$0]  (!%p3736_p6), %s4442_s11, 16, %s566_s27, [#allocation21]  }
  0xaa   : > { %s3167_s30 = scalar_lea.hbm %s4444_s13, 256 }
  0xab   : > { %p3168_p1 = scmp.ne.s32.totalorder %s4444_s13, %s3167_s30  ;;  %p3174_p0 = scmp.lt.u32.totalorder %s3167_s30, %s4444_s13 }
  0xad   : > { %p3170_p3 = pnand %p3168_p1, %p3750_p8 }
  0xaf   : > { %p3171_p13 = pneg %p3170_p3 }
  0xb1   : > { %p3176_p2 = pnand %p3174_p0, %p3171_p13 }
  0xb3   : > { %3179 = shalt.err (!%p3176_p2)
}
  0xb4   : > { %s3180_s20 = scalar_lea.vmem %s587_s0, 256  ;;  %p3188_p10 = scmp.lt.s32.totalorder %s587_s0, %s587_s0 }
  0xb5   : > { %p3181_p5 = scmp.ne.s32.totalorder %s587_s0, %s3180_s20  ;;  %p3189_p11 = scmp.lt.s32.totalorder %s3180_s20, %s3180_s20 }
  0xb7   : > { %p3183_p7 = pnand %p3181_p5, %p3750_p8  ;;  %p3190_p12 = por %p3189_p11, %p3188_p10 }
  0xb9   : > { %p3184_p9 = pneg %p3183_p7 }
  0xbb   : > { %p3191_p4 = pnand %p3190_p12, %p3184_p9 }
  0xbd   : > { %3194 = shalt.err (!%p3191_p4)
}
  0xbe   : > { %2851 = dma.hbm_to_vmem [thread:$0]  (!%p3736_p6), %s4444_s13, 256, %s587_s0, [#allocation24], %s3580_s25, %s3580_s25, %s3581_s26  }
  0xbf   : > { %s3586_s3 = smov [#allocation26]   ;;  %s3587_s23 = smov [#allocation7]  }
  0xc0   : > { %s610_s17 = sshll.u32 %s3586_s3, 4  ;;  %s458_s24 = sshll.u32 %s3587_s23, 4  ;;  %s611_s17 = int_to_ptr.vmem [resolvable:$true] %s610_s17  ;;  %s459_s24 = int_to_ptr.vmem [resolvable:$true] %s458_s24 }
  0xc1   : > { %s3195_s19 = scalar_lea.hbm %s4446_s15, 512 }
  0xc2   : > { %p3196_p1 = scmp.ne.s32.totalorder %s4446_s15, %s3195_s19  ;;  %p3202_p0 = scmp.lt.u32.totalorder %s3195_s19, %s4446_s15 }
  0xc4   : > { %p3198_p3 = pnand %p3196_p1, %p3750_p8 }
  0xc6   : > { %p3199_p13 = pneg %p3198_p3 }
  0xc8   : > { %p3204_p2 = pnand %p3202_p0, %p3199_p13 }
  0xca   : > { %3207 = shalt.err (!%p3204_p2)
}
  0xcb   : > { %s3208_s0 = scalar_lea.vmem %s611_s17, 512  ;;  %p3216_p10 = scmp.lt.s32.totalorder %s611_s17, %s611_s17 }
  0xcc   : > { %p3209_p5 = scmp.ne.s32.totalorder %s611_s17, %s3208_s0  ;;  %p3217_p11 = scmp.lt.s32.totalorder %s3208_s0, %s3208_s0 }
  0xce   : > { %p3211_p7 = pnand %p3209_p5, %p3750_p8  ;;  %p3218_p12 = por %p3217_p11, %p3216_p10 }
  0xd0   : > { %p3212_p9 = pneg %p3211_p7 }
  0xd2   : > { %p3219_p4 = pnand %p3218_p12, %p3212_p9 }
  0xd4   : > { %3222 = shalt.err (!%p3219_p4)
}
  0xd5   : > { %2857 = dma.hbm_to_vmem [thread:$0]  (!%p3736_p6), %s4446_s15, 512, %s611_s17, [#allocation27], %s3580_s25, %s3580_s25, %s3581_s26  }
  0xd6   : > { %s4480_s2 = sld [smem:[#allocation48_spill]] }
  0xdc   : > { %s3223_s29 = scalar_lea.hbm %s4480_s2, 16 }
  0xdd   : > { %p3224_p1 = scmp.ne.s32.totalorder %s4480_s2, %s3223_s29  ;;  %p3230_p0 = scmp.lt.u32.totalorder %s3223_s29, %s4480_s2 }
  0xdf   : > { %p3226_p3 = pnand %p3224_p1, %p3750_p8 }
  0xe1   : > { %p3227_p13 = pneg %p3226_p3 }
  0xe3   : > { %p3232_p2 = pnand %p3230_p0, %p3227_p13 }
  0xe5   : > { %3235 = shalt.err (!%p3232_p2)
}
  0xe6   : > { %s3236_s27 = scalar_lea.vmem %s459_s24, 16  ;;  %s3243_s25 = scalar_lea.vmem %s459_s24, 32 }
  0xe7   : > { %p3237_p5 = scmp.ne.s32.totalorder %s459_s24, %s3236_s27  ;;  %p3244_p10 = scmp.lt.s32.totalorder %s459_s24, %s459_s24 }
  0xe8   : > { %p3245_p11 = scmp.lt.s32.totalorder %s3243_s25, %s3236_s27 }
  0xe9   : > { %p3239_p7 = pnand %p3237_p5, %p3750_p8 }
  0xea   : > { %p3246_p12 = por %p3245_p11, %p3244_p10 }
  0xeb   : > { %p3240_p9 = pneg %p3239_p7 }
  0xed   : > { %p3247_p4 = pnand %p3246_p12, %p3240_p9 }
  0xef   : > { %3250 = shalt.err (!%p3247_p4)
}
  0xf0   : > { %2818 = dma.hbm_to_vmem [thread:$0]  (!%p3736_p6), %s4480_s2, 16, %s459_s24, [#allocation6]  }
  0xf1   : > { %s3588_s0 = smov [#allocation10]   ;;  %s3589_s3 = smov [#allocation13]  }
  0xf2   : > { %s482_s21 = sshll.u32 %s3588_s0, 4  ;;  %s506_s23 = sshll.u32 %s3589_s3, 4  ;;  %s483_s21 = int_to_ptr.vmem [resolvable:$true] %s482_s21  ;;  %s507_s23 = int_to_ptr.vmem [resolvable:$true] %s506_s23 }
  0xf3   : > { %s3251_s19 = scalar_lea.hbm %s4435_s4, 16 }
  0xf4   : > { %p3252_p1 = scmp.ne.s32.totalorder %s4435_s4, %s3251_s19  ;;  %p3258_p0 = scmp.lt.u32.totalorder %s3251_s19, %s4435_s4 }
  0xf6   : > { %p3254_p3 = pnand %p3252_p1, %p3750_p8 }
  0xf8   : > { %p3255_p13 = pneg %p3254_p3 }
  0xfa   : > { %p3260_p2 = pnand %p3258_p0, %p3255_p13 }
  0xfc   : > { %3263 = shalt.err (!%p3260_p2)
}
  0xfd   : > { %s3264_s24 = scalar_lea.vmem %s483_s21, 16  ;;  %s3271_s25 = scalar_lea.vmem %s483_s21, 32 }
  0xfe   : > { %p3265_p5 = scmp.ne.s32.totalorder %s483_s21, %s3264_s24  ;;  %p3272_p10 = scmp.lt.s32.totalorder %s483_s21, %s483_s21 }
  0xff   : > { %p3273_p11 = scmp.lt.s32.totalorder %s3271_s25, %s3264_s24 }
 0x100   : > { %p3267_p7 = pnand %p3265_p5, %p3750_p8 }
 0x101   : > { %p3274_p12 = por %p3273_p11, %p3272_p10 }
 0x102   : > { %p3268_p9 = pneg %p3267_p7 }
 0x104   : > { %p3275_p4 = pnand %p3274_p12, %p3268_p9 }
 0x106   : > { %3278 = shalt.err (!%p3275_p4)
}
 0x107   : > { %2824 = dma.hbm_to_vmem [thread:$0]  (!%p3736_p6), %s4435_s4, 16, %s483_s21, [#allocation9]  }
 0x108   : > { %s3279_s30 = scalar_lea.hbm %s4437_s6, 16 }
 0x109   : > { %p3280_p1 = scmp.ne.s32.totalorder %s4437_s6, %s3279_s30  ;;  %p3286_p0 = scmp.lt.u32.totalorder %s3279_s30, %s4437_s6 }
 0x10b   : > { %p3282_p3 = pnand %p3280_p1, %p3750_p8 }
 0x10d   : > { %p3283_p13 = pneg %p3282_p3 }
 0x10f   : > { %p3288_p2 = pnand %p3286_p0, %p3283_p13 }
 0x111   : > { %3291 = shalt.err (!%p3288_p2)
}
 0x112   : > { %s3292_s20 = scalar_lea.vmem %s507_s23, 16  ;;  %s3299_s21 = scalar_lea.vmem %s507_s23, 32 }
 0x113   : > { %p3293_p5 = scmp.ne.s32.totalorder %s507_s23, %s3292_s20  ;;  %p3300_p10 = scmp.lt.s32.totalorder %s507_s23, %s507_s23 }
 0x114   : > { %p3301_p11 = scmp.lt.s32.totalorder %s3299_s21, %s3292_s20 }
 0x115   : > { %p3295_p7 = pnand %p3293_p5, %p3750_p8 }
 0x116   : > { %p3302_p12 = por %p3301_p11, %p3300_p10 }
 0x117   : > { %p3296_p9 = pneg %p3295_p7 }
 0x119   : > { %p3303_p4 = pnand %p3302_p12, %p3296_p9 }
 0x11b   : > { %3306 = shalt.err (!%p3303_p4)
}
 0x11c   : > { %2830 = dma.hbm_to_vmem [thread:$0]  (!%p3736_p6), %s4437_s6, 16, %s507_s23, [#allocation12]  }
 0x11d   : > { %s3590_s25 = smov [#allocation16]   ;;  %s3591_s17 = smov [#allocation19]  }
 0x11e   : > { %s530_s26 = sshll.u32 %s3590_s25, 4  ;;  %s554_s0 = sshll.u32 %s3591_s17, 4  ;;  %s531_s26 = int_to_ptr.vmem [resolvable:$true] %s530_s26  ;;  %s555_s0 = int_to_ptr.vmem [resolvable:$true] %s554_s0 }
 0x11f   : > { %s3307_s29 = scalar_lea.hbm %s4439_s8, 16 }
 0x120   : > { %p3308_p1 = scmp.ne.s32.totalorder %s4439_s8, %s3307_s29  ;;  %p3314_p0 = scmp.lt.u32.totalorder %s3307_s29, %s4439_s8 }
 0x122   : > { %p3310_p3 = pnand %p3308_p1, %p3750_p8 }
 0x124   : > { %p3311_p13 = pneg %p3310_p3 }
 0x126   : > { %p3316_p2 = pnand %p3314_p0, %p3311_p13 }
 0x128   : > { %3319 = shalt.err (!%p3316_p2)
}
 0x129   : > { %s3320_s23 = scalar_lea.vmem %s531_s26, 16  ;;  %s3327_s21 = scalar_lea.vmem %s531_s26, 32 }
 0x12a   : > { %p3321_p5 = scmp.ne.s32.totalorder %s531_s26, %s3320_s23  ;;  %p3328_p10 = scmp.lt.s32.totalorder %s531_s26, %s531_s26 }
 0x12b   : > { %p3329_p11 = scmp.lt.s32.totalorder %s3327_s21, %s3320_s23 }
 0x12c   : > { %p3323_p7 = pnand %p3321_p5, %p3750_p8 }
 0x12d   : > { %p3330_p12 = por %p3329_p11, %p3328_p10 }
 0x12e   : > { %p3324_p9 = pneg %p3323_p7 }
 0x130   : > { %p3331_p4 = pnand %p3330_p12, %p3324_p9 }
 0x132   : > { %3334 = shalt.err (!%p3331_p4)
}
 0x133   : > { %2836 = dma.hbm_to_vmem [thread:$0]  (!%p3736_p6), %s4439_s8, 16, %s531_s26, [#allocation15]  }
 0x134   : > { %s3335_s3 = scalar_lea.hbm %s4441_s10, 16 }
 0x135   : > { %p3336_p1 = scmp.ne.s32.totalorder %s4441_s10, %s3335_s3  ;;  %p3342_p0 = scmp.lt.u32.totalorder %s3335_s3, %s4441_s10 }
 0x137   : > { %p3338_p3 = pnand %p3336_p1, %p3750_p8 }
 0x139   : > { %p3339_p13 = pneg %p3338_p3 }
 0x13b   : > { %p3344_p2 = pnand %p3342_p0, %p3339_p13 }
 0x13d   : > { %3347 = shalt.err (!%p3344_p2)
}
 0x13e   : > { %s3348_s22 = scalar_lea.vmem %s555_s0, 16  ;;  %s3355_s26 = scalar_lea.vmem %s555_s0, 32 }
 0x13f   : > { %p3349_p5 = scmp.ne.s32.totalorder %s555_s0, %s3348_s22  ;;  %p3356_p10 = scmp.lt.s32.totalorder %s555_s0, %s555_s0 }
 0x140   : > { %p3357_p11 = scmp.lt.s32.totalorder %s3355_s26, %s3348_s22 }
 0x141   : > { %p3351_p7 = pnand %p3349_p5, %p3750_p8 }
 0x142   : > { %p3358_p12 = por %p3357_p11, %p3356_p10 }
 0x143   : > { %p3352_p9 = pneg %p3351_p7 }
 0x145   : > { %p3359_p4 = pnand %p3358_p12, %p3352_p9 }
 0x147   : > { %3362 = shalt.err (!%p3359_p4)
}
 0x148   : > { %2842 = dma.hbm_to_vmem [thread:$0]  (!%p3736_p6), %s4441_s10, 16, %s555_s0, [#allocation18]  }
 0x149   : > { %s3592_s21 = smov [#allocation22]   ;;  %s3593_s24 = smov [#allocation25]  }
 0x14a   : > { %s576_s27 = sshll.u32 %s3592_s21, 4  ;;  %s600_s25 = sshll.u32 %s3593_s24, 4  ;;  %s577_s27 = int_to_ptr.vmem [resolvable:$true] %s576_s27  ;;  %s601_s25 = int_to_ptr.vmem [resolvable:$true] %s600_s25 }
 0x14b   : > { %s3363_s30 = scalar_lea.hbm %s4443_s12, 16 }
 0x14c   : > { %p3364_p1 = scmp.ne.s32.totalorder %s4443_s12, %s3363_s30  ;;  %p3370_p0 = scmp.lt.u32.totalorder %s3363_s30, %s4443_s12 }
 0x14e   : > { %p3366_p3 = pnand %p3364_p1, %p3750_p8 }
 0x150   : > { %p3367_p13 = pneg %p3366_p3 }
 0x152   : > { %p3372_p2 = pnand %p3370_p0, %p3367_p13 }
 0x154   : > { %3375 = shalt.err (!%p3372_p2)
}
 0x155   : > { %s3376_s0 = scalar_lea.vmem %s577_s27, 16  ;;  %s3383_s26 = scalar_lea.vmem %s577_s27, 32 }
 0x156   : > { %p3377_p5 = scmp.ne.s32.totalorder %s577_s27, %s3376_s0  ;;  %p3384_p10 = scmp.lt.s32.totalorder %s577_s27, %s577_s27 }
 0x157   : > { %p3385_p11 = scmp.lt.s32.totalorder %s3383_s26, %s3376_s0 }
 0x158   : > { %p3379_p7 = pnand %p3377_p5, %p3750_p8 }
 0x159   : > { %p3386_p12 = por %p3385_p11, %p3384_p10 }
 0x15a   : > { %p3380_p9 = pneg %p3379_p7 }
 0x15c   : > { %p3387_p4 = pnand %p3386_p12, %p3380_p9 }
 0x15e   : > { %3390 = shalt.err (!%p3387_p4)
}
 0x15f   : > { %2848 = dma.hbm_to_vmem [thread:$0]  (!%p3736_p6), %s4443_s12, 16, %s577_s27, [#allocation21]  }
 0x160   : > { %s3391_s17 = scalar_lea.hbm %s4445_s14, 16 }
 0x161   : > { %p3392_p1 = scmp.ne.s32.totalorder %s4445_s14, %s3391_s17  ;;  %p3398_p0 = scmp.lt.u32.totalorder %s3391_s17, %s4445_s14 }
 0x163   : > { %p3394_p3 = pnand %p3392_p1, %p3750_p8 }
 0x165   : > { %p3395_p13 = pneg %p3394_p3 }
 0x167   : > { %p3400_p2 = pnand %p3398_p0, %p3395_p13 }
 0x169   : > { %3403 = shalt.err (!%p3400_p2)
}
 0x16a   : > { %s3404_s28 = scalar_lea.vmem %s601_s25, 16  ;;  %s3411_s27 = scalar_lea.vmem %s601_s25, 32 }
 0x16b   : > { %p3405_p5 = scmp.ne.s32.totalorder %s601_s25, %s3404_s28  ;;  %p3412_p10 = scmp.lt.s32.totalorder %s601_s25, %s601_s25 }
 0x16c   : > { %p3413_p11 = scmp.lt.s32.totalorder %s3411_s27, %s3404_s28 }
 0x16d   : > { %p3407_p7 = pnand %p3405_p5, %p3750_p8 }
 0x16e   : > { %p3414_p12 = por %p3413_p11, %p3412_p10 }
 0x16f   : > { %p3408_p9 = pneg %p3407_p7 }
 0x171   : > { %p3415_p4 = pnand %p3414_p12, %p3408_p9 }
 0x173   : > { %3418 = shalt.err (!%p3415_p4)
}
 0x174   : > { %2854 = dma.hbm_to_vmem [thread:$0]  (!%p3736_p6), %s4445_s14, 16, %s601_s25, [#allocation24]  }
 0x175   : > { %s3594_s26 = smov [#allocation28]   ;;  %s3419_s24 = scalar_lea.hbm %s4447_s16, 16 }
 0x176   : > { %s624_s20 = sshll.u32 %s3594_s26, 4  ;;  %p3420_p1 = scmp.ne.s32.totalorder %s4447_s16, %s3419_s24  ;;  %s625_s20 = int_to_ptr.vmem [resolvable:$true] %s624_s20 }
 0x177   : > { %p3426_p0 = scmp.lt.u32.totalorder %s3419_s24, %s4447_s16 }
 0x178   : > { %p3422_p3 = pnand %p3420_p1, %p3750_p8 }
 0x17a   : > { %p3423_p13 = pneg %p3422_p3 }
 0x17c   : > { %p3428_p2 = pnand %p3426_p0, %p3423_p13 }
 0x17e   : > { %3431 = shalt.err (!%p3428_p2)
}
 0x17f   : > { %s3432_s25 = scalar_lea.vmem %s625_s20, 16  ;;  %s3439_s19 = scalar_lea.vmem %s625_s20, 32 }
 0x180   : > { %p3433_p5 = scmp.ne.s32.totalorder %s625_s20, %s3432_s25  ;;  %p3440_p10 = scmp.lt.s32.totalorder %s625_s20, %s625_s20 }
 0x181   : > { %p3441_p11 = scmp.lt.s32.totalorder %s3439_s19, %s3432_s25 }
 0x182   : > { %p3435_p7 = pnand %p3433_p5, %p3750_p8 }
 0x183   : > { %p3442_p12 = por %p3441_p11, %p3440_p10 }
 0x184   : > { %p3436_p9 = pneg %p3435_p7 }
 0x186   : > { %p3443_p4 = pnand %p3442_p12, %p3436_p9 }
 0x188   : > { %3446 = shalt.err (!%p3443_p4)
}
 0x189   : > { %s4481_s22 = sld [smem:[#allocation43_spill]]  ;;  %s4482_s0 = sld [smem:[#allocation42_spill]] }
 0x18a   : > { %s4483_s26 = sld [smem:[#allocation41_spill]]  ;;  %s4484_s18 = sld [smem:[#allocation40_spill]] }
 0x18b   : > { %s4485_s23 = sld [smem:[#allocation44_spill]] }
 0x18c   : > { %2860 = dma.hbm_to_vmem [thread:$0]  (!%p3736_p6), %s4447_s16, 16, %s625_s20, [#allocation27]  }
 0x18f   : > { %s2518_s21 = sadd.s32 4294967294, %s4481_s22   ;;  %s4072_s27 = sadd.s32 1, %s4481_s22  }
 0x190   : > { %s45_s1 = ssub.s32 %s4481_s22, %s4072_s27  ;;  %s48_s24 = sadd.s32 1, %s4482_s0 }
 0x191   : > { %p46_p8 = scmp.eq.s32.totalorder %s45_s1, 0  ;;  %p55_p1 = scmp.ne.s32.totalorder %s4482_s0, %s4483_s26 }
 0x192   : > { %p56_p3 = scmp.eq.s32.totalorder %s4481_s22, 0  ;;  %p61_p13 = scmp.ne.s32.totalorder %s4483_s26, %s4484_s18 }
 0x193   : > { %s4083_s17 = scalar_select %p46_p8, %s4482_s0, %s48_s24  }
 0x194   : > { %p4085_p0 = por %p56_p3, %p55_p1  ;;  %p4487_p2 = scmp.eq.s32.totalorder %s4485_s23, 0 }
 0x195   : > { %p421_p5 = scmp.eq.s32.totalorder %s4485_s23, 1  ;;  %p427_p7 = scmp.eq.s32.totalorder %s2518_s21, 1 }
 0x196   : > { %p4091_p6 = por %p4487_p2, %p61_p13  ;;  %p2885_p9 = scmp.lt.s32.totalorder %s4481_s22, 2 }
 0x197   : > { %s635_s30 = sand.u32 1, %s4482_s0   ;;  %p4098_p10 = por %p421_p5, %p55_p1 }
 0x198   : > { %p4102_p11 = por %p427_p7, %p61_p13  ;;  %s2537_s19 = sshll.u32 %s635_s30, 3 }
 0x199   : > { %s4489_s29 = scalar_select %p4098_p10, 1, 0 }
 0x19a   : > { %s4490_s25 = scalar_select %p4102_p11, 1, 0 }
 0x19b   : > { %s2538_s28 = sshll.u32 %s4481_s22, 7  ;;  %s4491_s1 = sld [smem:[#allocation46_spill]] }
 0x19c   : > { %s639_s0 = scalar_lea.vmem [#allocation2], %s2537_s19  ;;  %p4116_p12 = pnand %p2885_p9, %p4085_p0 }
 0x19d   : > { %s646_s23 = sshll.u32 %s639_s0, 4  ;;  %s636_s22 = scalar_lea.sflag [#allocation3], %s635_s30  ;;  %s4112_s23 = int_to_ptr.vmem [resolvable:$true] %s646_s23 }
 0x19e   : > { %p3449_p8 = pneg %p4116_p12 }
 0x1a1   : > { %s4110_s24 = scalar_lea.hbm %s4491_s1, %s2538_s28  ;;  %s3452_s26 = scalar_lea.hbm %s4491_s1, 256 }
 0x1a2   : > { %s3447_s2 = scalar_lea.hbm %s4110_s24, 128  ;;  %p3453_p13 = scmp.lt.u32.totalorder %s4110_s24, %s4491_s1 }
 0x1a3   : > { %p3448_p4 = scmp.ne.s32.totalorder %s4110_s24, %s3447_s2  ;;  %p3454_p0 = scmp.lt.u32.totalorder %s3452_s26, %s3447_s2 }
 0x1a4   : > { %p3456_p5 = scmp.lt.u32.totalorder %s3447_s2, %s4110_s24 }
 0x1a5   : > { %p3450_p1 = pnand %p3449_p8, %p3448_p4  ;;  %p3455_p2 = por %p3454_p0, %p3453_p13 }
 0x1a7   : > { %p3451_p3 = pneg %p3450_p1  ;;  %p3457_p7 = por %p3456_p5, %p3455_p2 }
 0x1a9   : > { %p3458_p9 = pnand %p3457_p7, %p3451_p3 }
 0x1ab   : > { %3461 = shalt.err (!%p3458_p9)
}
 0x1ac   : > { %s3462_s30 = scalar_lea.vmem %s4112_s23, 128  ;;  %s3595_s0 = smov [#allocation2]  }
 0x1ad   : > { %p3463_p4 = scmp.ne.s32.totalorder %s4112_s23, %s3462_s30  ;;  %s3467_s19 = sshll.u32 %s3595_s0, 4  ;;  %s3468_s19 = int_to_ptr.vmem [resolvable:$false] %s3467_s19 }
 0x1ae   : > { %s3469_s28 = scalar_lea.vmem %s3468_s19, 256  ;;  %p3470_p10 = scmp.lt.s32.totalorder %s4112_s23, %s3468_s19 }
 0x1af   : > { %p3465_p1 = pnand %p3463_p4, %p3449_p8  ;;  %p3471_p13 = scmp.lt.s32.totalorder %s3469_s28, %s3462_s30 }
 0x1b1   : > { %p3466_p11 = pneg %p3465_p1  ;;  %p3472_p0 = por %p3471_p13, %p3470_p10 }
 0x1b3   : > { %p3473_p2 = pnand %p3472_p0, %p3466_p11 }
 0x1b5   : > { %3476 = shalt.err (!%p3473_p2)
}
 0x1b6   : > { %2864 = dma.hbm_to_vmem [thread:$0]  (!%p4116_p12), %s4110_s24, 128, %s4112_s23, %s636_s22  }
 0x1b7   : > { %s4493_s2 = sld [smem:[#allocation45_spill]] }
 0x1bd   : > { %p4494_p3 = scmp.ne.s32.totalorder %s4493_s2, 0 }
 0x1be   : > { %s4495_s26 = sld [smem:[#allocation41_spill]] (!%p4494_p3) }
 0x1bf   : > { %655 = sbr.rel (%p4494_p3) target bundleno = 3105 (0xc21), region = 88 }
 0x1c4   : > { %s4148_s3 = sand.u32 (!%p4494_p3), 1, %s4495_s26  }
 0x1c5   : > { %s2540_s18 = sshll.u32 (!%p4494_p3), %s4148_s3, 3  ;;  %s658_s30 = scalar_lea.sflag (!%p4494_p3), [#allocation3], %s4148_s3 }
 0x1c6   : > { %s661_s0 = scalar_lea.vmem [#allocation2], %s2540_s18 }
 0x1c7   : > { %3522 = dma.done.wait (%p4091_p6), %s658_s30, 128  }
 0x1c8   : > { %3524 = vsyncadd (%p4091_p6), %s658_s30, 4294967168  ;;  %s4496_s24 = sld [smem:[#allocation44_spill]] }
 0x1ce   : > { %p4497_p10 = scmp.eq.s32.totalorder %s4496_s24, 0 }
 0x1d0   : > { %3526 = dma.done.wait (%p4497_p10), [#allocation6], 32   ;;  %p4498_p11 = pmov %p4497_p10 }
 0x1d1   : > { %p4499_p12 = pmov %p4497_p10 }
 0x1d2   : > { %3528 = vsyncadd (%p4498_p11), [#allocation6], 4294967264 }
 0x1d3   : > { %3530 = dma.done.wait (%p4499_p12), [#allocation9], 272   ;;  %p4500_p8 = pmov %p4497_p10 }
 0x1d5   : > { %3532 = vsyncadd (%p4500_p8), [#allocation9], 4294967024  ;;  %p4501_p5 = pmov %p4500_p8 }
 0x1d7   : > { %3534 = dma.done.wait (%p4501_p5), [#allocation12], 272   ;;  %p4502_p7 = pmov %p4501_p5 }
 0x1d8   : > { %p4503_p6 = pmov %p4501_p5 }
 0x1d9   : > { %3536 = vsyncadd (%p4502_p7), [#allocation12], 4294967024 }
 0x1da   : > { %3538 = dma.done.wait (%p4503_p6), [#allocation15], 272   ;;  %p4504_p9 = pmov %p4501_p5 }
 0x1db   : > { %p4505_p4 = pmov %p4501_p5 }
 0x1dc   : > { %3540 = vsyncadd (%p4504_p9), [#allocation15], 4294967024 }
 0x1dd   : > { %3542 = dma.done.wait (%p4505_p4), [#allocation18], 272   ;;  %p4506_p1 = pmov %p4505_p4 }
 0x1df   : > { %3544 = vsyncadd (%p4506_p1), [#allocation18], 4294967024  ;;  %p4507_p13 = pmov %p4506_p1 }
 0x1e0   : > { %p4508_p0 = pmov %p4506_p1 }
 0x1e1   : > { %3546 = dma.done.wait (%p4507_p13), [#allocation21], 32  }
 0x1e2   : > { %3548 = vsyncadd (%p4508_p0), [#allocation21], 4294967264  ;;  %p4509_p2 = pmov %p4508_p0 }
 0x1e3   : > { %p4510_p3 = pmov %p4508_p0 }
 0x1e4   : > { %3550 = dma.done.wait (%p4509_p2), [#allocation24], 272  }
 0x1e5   : > { %3552 = vsyncadd (%p4510_p3), [#allocation24], 4294967024  ;;  %p4511_p10 = pmov %p4508_p0 }
 0x1e6   : > { %p4512_p11 = pmov %p4508_p0 }
 0x1e7   : > { %3554 = dma.done.wait (%p4511_p10), [#allocation27], 528  }
 0x1e8   : > { %3556 = vsyncadd (%p4512_p11), [#allocation27], 4294966768  ;;  %vm780_vm0 = vcmask 261120   ;;  %v4190_v0 = vld [vmem:[%s661_s0] sm:$0xff]  ;;  %v2963_v7 = vld [vmem:[#allocation8] sm:$0xff]   ;;  %v3596_v9 = vmov 0.0   ;;  %v1017_v42 = vlaneseq }
 0x1e9   : > { %v781_v1 = vsel %vm780_vm0, %v4190_v0, 0.0  ;;  %v2964_v8 = vld [vmem:[#allocation11] sm:$0xff]   ;;  %2644 = vmatprep.subr.bf16.mxu0 %v3596_v9  ;;  %2652 = vmatprep.subr.bf16.mxu1 %v3596_v9  ;;  %v2965_v10 = vld [vmem:[#allocation8 + $0x8] sm:$0xff]   ;;  %v2966_v11 = vld [vmem:[#allocation11 + $0x8] sm:$0xff]   ;;  %vm3597_vm1 = vmmov 0   ;;  %s3598_s20 = smov 104  }
 0x1ea   : > { %782 = vadd.xlane.f32.xlu0 %v781_v1  ;;  %2645 = vmatpush3.bf16.msra.mxu0 %v2963_v7  ;;  %v2558_v16 = vld [vmem:[#allocation5] ss:$0 sm:$0xff]  ;;  %v2559_v18 = vld [vmem:[#allocation7] ss:$0 sm:$0xff]  ;;  %v2967_v21 = vld [vmem:[#allocation14] sm:$0xff]   ;;  %s3599_s23 = smov 120  }
 0x1eb   : > { %2653 = vmatpush3.bf16.msra.mxu1 %v2964_v8  ;;  %2646 = vmatprep.subr.bf16.mxu0 %v3596_v9  ;;  %v2968_v23 = vld [vmem:[#allocation14 + $0x8] sm:$0xff]   ;;  %v2564_v24 = vld [vmem:[#allocation13] ss:$0 sm:$0xff]  ;;  %s3600_s21 = smov 112   ;;  %v3601_v40 = vmov 1983009808  }
 0x1ec   : > { %2654 = vmatprep.subr.bf16.mxu1 %v3596_v9  ;;  %2648 = vmatprep.mubr.msk.bf16.mxu0 %vm3597_vm1, %v3596_v9  ;;  %v2560_v34 = vld [vmem:[#allocation10] ss:$0 sm:$0xff]  ;;  %v1015_v41 = vunpack.c.l.s4 %v3601_v40  ;;  %v3602_v43 = vmov 1934713408   ;;  %v1018_v46 = vshrl.u32 %v1017_v42, 7  ;;  %vm1452_vm2 = vcmask 64512  }
 0x1ed   : > { %2656 = vmatprep.mubr.msk.bf16.mxu1 %vm3597_vm1, %v3596_v9  ;;  %v1047_v44 = vunpack.c.l.s4 %v3602_v43  ;;  %vm1688_vm3 = vcmask 1043456   ;;  %s3603_s22 = smov 16   ;;  %s3604_s19 = smov 8   ;;  %vm2019_vm4 = vcmask 130048   ;;  %vm2021_vm5 = vcmask 195584  }
 0x1ee   : > { %2647 = vmatpush3.bf16.msra.mxu0 %v2965_v10  ;;  %v1016_v45 = vunpack.c.0.s8 %v1015_v41  ;;  %s3605_s28 = smov 24   ;;  %vm2236_vm6 = vcmask 523264   ;;  %s2605_s2 = sshll.u32 %s4496_s24, 7 }
 0x1ef   : > { %2655 = vmatpush3.bf16.msra.mxu1 %v2966_v11  ;;  %2660 = vmatprep.subr.bf16.mxu0 %v3596_v9  ;;  %v1048_v49 = vunpack.c.0.s8 %v1047_v44  ;;  %s775_s26 = scalar_lea.vmem [#allocation29], %s2540_s18  ;;  %s2283_s18 = scalar_lea.sflag [#allocation4], %s4148_s3 }
 0x1f0   : > { %2668 = vmatprep.subr.bf16.mxu1 %v3596_v9  ;;  %v4225_v50 = vsub.s32 %v1016_v45, %v1018_v46  ;;  %s2296_s30 = sshll.u32 %s775_s26, 4  ;;  %p4514_p8 = scmp.ne.s32.totalorder %s4489_s29, 0  ;;  %s4388_s30 = int_to_ptr.vmem [resolvable:$true] %s2296_s30 }
 0x1f1   : > { %v4227_v56 = vsub.s32 %v1048_v49, %v1018_v46  ;;  %s3477_s24 = scalar_lea.vmem %s4388_s30, 128 }
 0x1f2   : > { %p3478_p12 = scmp.ne.s32.totalorder %s4388_s30, %s3477_s24 }
 0x1f4   : > { %p3479_p5 = pnand %p3478_p12, %p4514_p8 }
 0x1f6   : > { %p3480_p7 = pneg %p3479_p5 }
 0x277   : > { %v783_v2 = vpop.xlane.xlu0 %782 }
 0x278   : > { %v785_v3 = vmul.f32 0.03125, %v783_v2 }
 0x27a   : > { %v786_v4 = vsub.f32 %v4190_v0, %v785_v3 }
 0x27c   : > { %v787_v5 = vmul.f32 %v786_v4, %v786_v4 }
 0x27e   : > { %v788_v6 = vsel %vm780_vm0, %v787_v5, 0.0 }
 0x27f   : > { %789 = vadd.xlane.f32.xlu0 %v788_v6 }
 0x30c   : > { %v790_v12 = vpop.xlane.xlu0 %789 }
 0x30d   : > { %v791_v13 = vmul.f32 0.03125, %v790_v12 }
 0x30f   : > { %v792_v14 = vadd.f32 1e-05, %v791_v13 }
 0x311   : > { %2977 = vrsqrt.f32 %v792_v14 }
 0x31b   : > { %v2978_v15 = vpop.eup %2977 }
 0x31c   : > { %v794_v17 = vmul.f32 %v2978_v15, %v786_v4 }
 0x31e   : > { %v801_v19 = vmul.f32 %v2558_v16, %v794_v17 }
 0x320   : > { %v808_v20 = vadd.f32 %v2559_v18, %v801_v19 }
 0x322   : > { %v809_v22 = vpack.c.bf16 %v808_v20, %v808_v20 }
 0x324   : > { %2649 = vmatmul.mubr.msk.bf16.vlgmr.msra.gmra.mrb[0].mxu0 %vm780_vm0, %v809_v22  ;;  %2657 = vmatmul.mubr.msk.bf16.vlgmr.msra.gmra.mrb[0].mxu1 %vm780_vm0, %v809_v22 }
 0x325   : > { %2661 = vmatpush3.bf16.msra.mxu0 %v2967_v21  ;;  %2664 = vmatprep.mubr.msk.bf16.mxu0 %vm3597_vm1, %v3596_v9 }
 0x326   : > { %2662 = vmatprep.subr.bf16.mxu0 %v3596_v9  ;;  %2670 = vmatprep.mubr.msk.bf16.mxu1 %vm3597_vm1, %v3596_v9 }
 0x329   : > { %2663 = vmatpush3.bf16.msra.mxu0 %v2968_v23 }
 0x32a   : > { %2674 = vmatprep.subr.bf16.mxu0 %v3596_v9 }
 0x32c   : > { %2665 = vmatmul.mubr.msk.bf16.vlgmr.msra.gmra.mrb[4].mxu0 %vm780_vm0, %v809_v22 }
 0x32d   : > { %2676 = vmatprep.mubr.msk.bf16.mxu0 %vm3597_vm1, %v3596_v9 }
 0x3f7   : > { %v870_v25 = vpop.f32.mrb[0].mxu0  ;;  %v933_v26 = vpop.f32.mrb[0].mxu1 }
 0x3f8   : > { %v934_v27 = vadd.f32 %v2564_v24, %v933_v26  ;;  %v2650_v28 = vpop.f32.mrb[1].mxu0  ;;  %v2658_v29 = vpop.f32.mrb[1].mxu1  ;;  %v871_v36 = vadd.f32 %v2560_v34, %v870_v25 }
 0x3f9   : > { %v873_v30 = vpop.f32.mrb[2].mxu0  ;;  %v936_v31 = vpop.f32.mrb[2].mxu1 }
 0x3fa   : > { %1159 = vrot.lane.b32.xlu0 %v934_v27, %s3598_s20  ;;  %1153 = vrot.lane.b32.xlu1 %v934_v27, %s3599_s23  ;;  %v2651_v32 = vpop.f32.mrb[3].mxu0  ;;  %v2659_v33 = vpop.f32.mrb[3].mxu1 }
 0x3fe   : > { %1156 = vrot.lane.b32.xlu1 %v934_v27, %s3600_s21 }
 0x3ff   : > { %v4220_v35 = vpop.f32.mrb[4].mxu0 }
 0x400   : > { %v2666_v37 = vpop.f32.mrb[5].mxu0 }
 0x401   : > { %v999_v38 = vpop.f32.mrb[6].mxu0 }
 0x402   : > { %1003 = vrot.lane.b32.xlu1 %v871_v36, %s3599_s23  ;;  %v2667_v39 = vpop.f32.mrb[7].mxu0 }
 0x406   : > { %1006 = vrot.lane.b32.xlu1 %v871_v36, %s3600_s21 }
 0x40a   : > { %1009 = vrot.lane.b32.xlu1 %v871_v36, %s3598_s20 }
 0x46c   : > { %v1160_v47 = vpop.permute.xlu0 %1159  ;;  %v1154_v48 = vpop.permute.xlu1 %1153 }
 0x46d   : > { %v1178_v51 = vcombine.low %v1154_v48, %v1160_v47  ;;  %v1179_v52 = vcombine.high %v1154_v48, %v1160_v47 }
 0x46f   : > { %v1186_v57 = vrot.slane %v1178_v51, %v4225_v50  ;;  %v1193_v58 = vrot.slane %v1179_v52, %v4225_v50 }
 0x470   : > { %v1157_v53 = vpop.permute.xlu1 %1156 }
 0x471   : > { %v1162_v54 = vcombine.low %v934_v27, %v1157_v53  ;;  %v1163_v55 = vcombine.high %v934_v27, %v1157_v53 }
 0x473   : > { %v1170_v59 = vrot.slane %v1162_v54, %v4225_v50  ;;  %v1177_v60 = vrot.slane %v1163_v55, %v4225_v50 }
 0x474   : > { %v1004_v61 = vpop.permute.xlu1 %1003 }
 0x475   : > { %v1194_v62 = vcombine.low %v1170_v59, %v1186_v57  ;;  %v1195_v63 = vcombine.high %v1170_v59, %v1186_v57  ;;  %v1210_v1 = vcombine.low %v1177_v60, %v1193_v58  ;;  %v1211_v2 = vcombine.high %v1177_v60, %v1193_v58 }
 0x477   : > { %v1202_v3 = vrot.slane %v1194_v62, %v4227_v56  ;;  %v1209_v4 = vrot.slane %v1195_v63, %v4227_v56  ;;  %v1218_v5 = vrot.slane %v1210_v1, %v4227_v56  ;;  %v1225_v6 = vrot.slane %v1211_v2, %v4227_v56 }
 0x478   : > { %v1007_v7 = vpop.permute.xlu1 %1006 }
 0x479   : > { %v1230_v8 = vcombine.low %v1202_v3, %v1209_v4  ;;  %v2574_v10 = vcombine.high %v1202_v3, %v1209_v4  ;;  %v1246_v11 = vcombine.low %v1218_v5, %v1225_v6  ;;  %v2575_v12 = vcombine.high %v1218_v5, %v1225_v6 }
 0x47a   : > { %v1012_v13 = vcombine.low %v871_v36, %v1007_v7  ;;  %v1013_v14 = vcombine.high %v871_v36, %v1007_v7 }
 0x47b   : > { %v1237_v15 = vrot.slane %v1230_v8, %v4225_v50  ;;  %v1245_v16 = vrot.slane %v2574_v10, %v4225_v50  ;;  %v1253_v17 = vrot.slane %v1246_v11, %v4225_v50  ;;  %v1261_v18 = vrot.slane %v2575_v12, %v4225_v50 }
 0x47c   : > { %v1010_v19 = vpop.permute.xlu1 %1009  ;;  %v1020_v24 = vrot.slane %v1012_v13, %v4225_v50  ;;  %v1027_v25 = vrot.slane %v1013_v14, %v4225_v50 }
 0x47d   : > { %v1028_v20 = vcombine.low %v1004_v61, %v1010_v19  ;;  %v1029_v21 = vcombine.high %v1004_v61, %v1010_v19  ;;  %v1262_v22 = vcombine.low %v1237_v15, %v1245_v16  ;;  %v1278_v23 = vcombine.low %v1253_v17, %v1261_v18 }
 0x47e   : > { %v1263_v30 = vcombine.high %v1237_v15, %v1245_v16  ;;  %v1279_v31 = vcombine.high %v1253_v17, %v1261_v18 }
 0x47f   : > { %v1036_v26 = vrot.slane %v1028_v20, %v4225_v50  ;;  %v1043_v27 = vrot.slane %v1029_v21, %v4225_v50  ;;  %v1270_v28 = vrot.slane %v1262_v22, %v4227_v56  ;;  %v1286_v29 = vrot.slane %v1278_v23, %v4227_v56 }
 0x480   : > { %v1277_v45 = vrot.slane %v1263_v30, %v4227_v56  ;;  %v1293_v46 = vrot.slane %v1279_v31, %v4227_v56 }
 0x481   : > { %v1044_v32 = vcombine.low %v1020_v24, %v1036_v26  ;;  %v1045_v33 = vcombine.high %v1020_v24, %v1036_v26  ;;  %v1060_v34 = vcombine.low %v1027_v25, %v1043_v27  ;;  %v1061_v36 = vcombine.high %v1027_v25, %v1043_v27 }
 0x482   : > { %v1294_v37 = vcombine.low %v1270_v28, %v1286_v29  ;;  %v1295_v38 = vcombine.high %v1270_v28, %v1286_v29  ;;  %v1296_v61 = vcombine.low %v1277_v45, %v1293_v46  ;;  %v1297_v62 = vcombine.high %v1277_v45, %v1293_v46 }
 0x483   : > { %v1052_v39 = vrot.slane %v1044_v32, %v4227_v56  ;;  %v1059_v40 = vrot.slane %v1045_v33, %v4227_v56  ;;  %v1068_v41 = vrot.slane %v1060_v34, %v4227_v56  ;;  %v1075_v42 = vrot.slane %v1061_v36, %v4227_v56 }
 0x484   : > { %v1298_v43 = vpack.c.bf16 %v1294_v37, %v1294_v37  ;;  %v1299_v44 = vpack.c.bf16 %v1295_v38, %v1295_v38  ;;  %v1300_v6 = vpack.c.bf16 %v1296_v61, %v1296_v61  ;;  %v1301_v7 = vpack.c.bf16 %v1297_v62, %v1297_v62 }
 0x485   : > { %v1080_v47 = vcombine.low %v1052_v39, %v1059_v40  ;;  %v2572_v48 = vcombine.high %v1052_v39, %v1059_v40  ;;  %v1096_v49 = vcombine.low %v1068_v41, %v1075_v42  ;;  %v2573_v51 = vcombine.high %v1068_v41, %v1075_v42  ;;  %v2568_v40 = vld [vmem:[#allocation16] ss:$0 sm:$0xff] }
 0x486   : > { %v1457_v52 = vsel %vm1452_vm2, %v1298_v43, 0  ;;  %v1503_v53 = vsel %vm1452_vm2, %v1299_v44, 0  ;;  %v1549_v13 = vsel %vm1452_vm2, %v1300_v6, 0  ;;  %v1595_v14 = vsel %vm1452_vm2, %v1301_v7, 0 }
 0x487   : > { %v1087_v54 = vrot.slane %v1080_v47, %v4225_v50  ;;  %v1095_v55 = vrot.slane %v2572_v48, %v4225_v50  ;;  %v1103_v57 = vrot.slane %v1096_v49, %v4225_v50  ;;  %v1111_v58 = vrot.slane %v2573_v51, %v4225_v50  ;;  %2669 = vmatpush3.bf16.xpose.msra.mxu1 %v1457_v52 }
 0x488   : > { %2675 = vmatpush3.bf16.xpose.msra.mxu0 %v1503_v53  ;;  %2680 = vmatprep.subr.bf16.mxu1 %v3596_v9  ;;  %v997_v41 = vadd.f32 %v2568_v40, %v4220_v35 }
 0x489   : > { %v1112_v59 = vcombine.low %v1087_v54, %v1095_v55  ;;  %v1128_v60 = vcombine.low %v1103_v57, %v1111_v58  ;;  %2686 = vmatprep.subr.bf16.mxu0 %v3596_v9  ;;  %v1113_v63 = vcombine.high %v1087_v54, %v1095_v55  ;;  %v1129_v1 = vcombine.high %v1103_v57, %v1111_v58 }
 0x48b   : > { %v1120_v2 = vrot.slane %v1112_v59, %v4227_v56  ;;  %v1136_v3 = vrot.slane %v1128_v60, %v4227_v56  ;;  %v1127_v11 = vrot.slane %v1113_v63, %v4227_v56  ;;  %v1143_v12 = vrot.slane %v1129_v1, %v4227_v56 }
 0x48d   : > { %v1144_v4 = vcombine.low %v1120_v2, %v1136_v3  ;;  %v1145_v5 = vcombine.high %v1120_v2, %v1136_v3  ;;  %v1146_v15 = vcombine.low %v1127_v11, %v1143_v12  ;;  %v1147_v16 = vcombine.high %v1127_v11, %v1143_v12 }
 0x48f   : > { %v1148_v8 = vpack.c.bf16 %v1144_v4, %v1144_v4  ;;  %v1149_v10 = vpack.c.bf16 %v1145_v5, %v1145_v5  ;;  %v1150_v17 = vpack.c.bf16 %v1146_v15, %v1146_v15  ;;  %v1151_v18 = vpack.c.bf16 %v1147_v16, %v1147_v16 }
 0x491   : > { %2671 = vmatmul.mubr.msk.bf16.vlgmr.msra.gmra.mrb[4].mxu1 %vm1452_vm2, %v1148_v8  ;;  %2677 = vmatmul.mubr.msk.bf16.vlgmr.msra.gmra.mrb[8].mxu0 %vm1452_vm2, %v1149_v10 }
 0x492   : > { %2681 = vmatpush3.bf16.xpose.msra.mxu1 %v1549_v13  ;;  %2687 = vmatpush3.bf16.xpose.msra.mxu0 %v1595_v14 }
 0x493   : > { %2682 = vmatprep.mubr.msk.bf16.mxu1 %vm3597_vm1, %v3596_v9  ;;  %2688 = vmatprep.mubr.msk.bf16.mxu0 %vm3597_vm1, %v3596_v9 }
 0x494   : > { %2692 = vmatprep.subr.bf16.mxu1 %v3596_v9  ;;  %2698 = vmatprep.subr.bf16.mxu0 %v3596_v9 }
 0x499   : > { %2683 = vmatmul.mubr.msk.bf16.vlgmr.msra.gmra.mrb[8].mxu1 %vm1452_vm2, %v1150_v17  ;;  %2689 = vmatmul.mubr.msk.bf16.vlgmr.msra.gmra.mrb[12].mxu0 %vm1452_vm2, %v1151_v18 }
 0x49a   : > { %2694 = vmatprep.mubr.msk.bf16.mxu1 %vm3597_vm1, %v3596_v9  ;;  %2700 = vmatprep.mubr.msk.bf16.mxu0 %vm3597_vm1, %v3596_v9 }
 0x564   : > { %v1493_v19 = vpop.f32.mrb[4].mxu1  ;;  %v1539_v20 = vpop.f32.mrb[8].mxu0 }
 0x565   : > { %v2672_v21 = vpop.f32.mrb[5].mxu1  ;;  %v2678_v22 = vpop.f32.mrb[9].mxu0  ;;  %v1637_v23 = vsel %vm1452_vm2, %v1493_v19, -inf  ;;  %v1640_v24 = vsel %vm1452_vm2, %v1539_v20, -inf }
 0x566   : > { %1638 = vmax.xlane.f32.xlu1 %v1637_v23  ;;  %v1496_v25 = vpop.f32.mrb[6].mxu1  ;;  %1641 = vmax.xlane.f32.xlu0 %v1640_v24  ;;  %v1542_v26 = vpop.f32.mrb[10].mxu0 }
 0x567   : > { %v2673_v27 = vpop.f32.mrb[7].mxu1  ;;  %v2679_v28 = vpop.f32.mrb[11].mxu0 }
 0x56c   : > { %v1585_v29 = vpop.f32.mrb[8].mxu1  ;;  %v1631_v30 = vpop.f32.mrb[12].mxu0 }
 0x56d   : > { %v2684_v31 = vpop.f32.mrb[9].mxu1  ;;  %v2690_v32 = vpop.f32.mrb[13].mxu0  ;;  %v1643_v33 = vsel %vm1452_vm2, %v1585_v29, -inf  ;;  %v1646_v39 = vsel %vm1452_vm2, %v1631_v30, -inf }
 0x56e   : > { %1644 = vmax.xlane.f32.xlu1 %v1643_v33  ;;  %v1588_v34 = vpop.f32.mrb[10].mxu1  ;;  %v1634_v36 = vpop.f32.mrb[14].mxu0 }
 0x56f   : > { %v2685_v37 = vpop.f32.mrb[11].mxu1  ;;  %v2691_v38 = vpop.f32.mrb[15].mxu0 }
 0x572   : > { %1647 = vmax.xlane.f32.xlu1 %v1646_v39 }
 0x583   : > { %1306 = vrot.lane.b32.xlu1 %v997_v41, %s3600_s21 }
 0x5f3   : > { %v1639_v42 = vpop.xlane.xlu1 %1638  ;;  %v1642_v43 = vpop.xlane.xlu0 %1641 }
 0x5f4   : > { %v1649_v44 = vsub.f32 %v1493_v19, %v1639_v42  ;;  %v1650_v45 = vsub.f32 %v1539_v20, %v1642_v43 }
 0x5f6   : > { %v1653_v46 = vmul.f32 1.442695, %v1649_v44  ;;  %v1655_v47 = vmul.f32 1.442695, %v1650_v45 }
 0x5f8   : > { %2979 = vpow2.f32 %v1653_v46 }
 0x5f9   : > { %2981 = vpow2.f32 %v1655_v47 }
 0x5fb   : > { %v1645_v52 = vpop.xlane.xlu1 %1644 }
 0x5fc   : > { %v1651_v54 = vsub.f32 %v1585_v29, %v1645_v52 }
 0x5fe   : > { %v1657_v57 = vmul.f32 1.442695, %v1651_v54 }
 0x5ff   : > { %v1648_v53 = vpop.xlane.xlu1 %1647 }
 0x600   : > { %v1652_v55 = vsub.f32 %v1631_v30, %v1648_v53  ;;  %2983 = vpow2.f32 %v1657_v57 }
 0x602   : > { %v4287_v48 = vpop.eup %2979  ;;  %v1659_v58 = vmul.f32 1.442695, %v1652_v55 }
 0x603   : > { %v4289_v49 = vpop.eup %2981  ;;  %v1661_v51 = vsel %vm1452_vm2, %v4287_v48, 0.0  ;;  %v1307_v63 = vpop.permute.xlu1 %1306 }
 0x604   : > { %1662 = vadd.xlane.f32.xlu0 %v1661_v51  ;;  %v1664_v35 = vsel %vm1452_vm2, %v4289_v49, 0.0  ;;  %2985 = vpow2.f32 %v1659_v58  ;;  %v1312_v3 = vcombine.low %v997_v41, %v1307_v63  ;;  %v1313_v4 = vcombine.high %v997_v41, %v1307_v63 }
 0x605   : > { %1665 = vadd.xlane.f32.xlu1 %v1664_v35 }
 0x606   : > { %v1320_v10 = vrot.slane %v1312_v3, %v4225_v50  ;;  %v1327_v11 = vrot.slane %v1313_v4, %v4225_v50 }
 0x60a   : > { %v4297_v59 = vpop.eup %2983 }
 0x60b   : > { %v1667_v61 = vsel %vm1452_vm2, %v4297_v59, 0.0 }
 0x60e   : > { %v4299_v60 = vpop.eup %2985 }
 0x60f   : > { %v1670_v62 = vsel %vm1452_vm2, %v4299_v60, 0.0 }
 0x616   : > { %1309 = vrot.lane.b32.xlu1 %v997_v41, %s3598_s20 }
 0x61a   : > { %1303 = vrot.lane.b32.xlu0 %v997_v41, %s3599_s23  ;;  %s4513_s23 = sld [smem:[#allocation50_spill]] }
 0x620   : > { %s4386_s21 = scalar_lea.hbm %s4513_s23, %s2605_s2 }
 0x639   : > { %1668 = vadd.xlane.f32.xlu0 %v1667_v61 }
 0x63a   : > { %1671 = vadd.xlane.f32.xlu1 %v1670_v62 }
 0x691   : > { %v1663_v1 = vpop.xlane.xlu0 %1662 }
 0x692   : > { %v1666_v2 = vpop.xlane.xlu1 %1665  ;;  %2987 = vrcp.f32 %v1663_v1 }
 0x693   : > { %2989 = vrcp.f32 %v1666_v2 }
 0x695   : > { %v1304_v5 = vpop.permute.xlu0 %1303 }
 0x696   : > { %v1310_v6 = vpop.permute.xlu1 %1309 }
 0x697   : > { %v1328_v7 = vcombine.low %v1304_v5, %v1310_v6  ;;  %v1329_v8 = vcombine.high %v1304_v5, %v1310_v6  ;;  %v2969_v5 = vld [vmem:[#allocation17] sm:$0xff]  }
 0x699   : > { %v1336_v12 = vrot.slane %v1328_v7, %v4225_v50  ;;  %v1343_v13 = vrot.slane %v1329_v8, %v4225_v50 }
 0x69b   : > { %v1344_v14 = vcombine.low %v1320_v10, %v1336_v12  ;;  %v1345_v15 = vcombine.high %v1320_v10, %v1336_v12  ;;  %v1360_v16 = vcombine.low %v1327_v11, %v1343_v13  ;;  %v1361_v17 = vcombine.high %v1327_v11, %v1343_v13 }
 0x69c   : > { %v2988_v37 = vpop.eup %2987 }
 0x69d   : > { %v1352_v18 = vrot.slane %v1344_v14, %v4227_v56  ;;  %v1359_v19 = vrot.slane %v1345_v15, %v4227_v56  ;;  %v1368_v20 = vrot.slane %v1360_v16, %v4227_v56  ;;  %v1375_v21 = vrot.slane %v1361_v17, %v4227_v56  ;;  %v2990_v40 = vpop.eup %2989 }
 0x69e   : > { %v1677_v45 = vmul.f32 %v2988_v37, %v4287_v48  ;;  %v1678_v46 = vmul.f32 %v2990_v40, %v4289_v49 }
 0x69f   : > { %v1380_v22 = vcombine.low %v1352_v18, %v1359_v19  ;;  %v2576_v23 = vcombine.high %v1352_v18, %v1359_v19  ;;  %v1396_v24 = vcombine.low %v1368_v20, %v1375_v21  ;;  %v2577_v25 = vcombine.high %v1368_v20, %v1375_v21 }
 0x6a0   : > { %v1681_v55 = vpack.c.bf16 %v1677_v45, %v1677_v45  ;;  %v1682_v57 = vpack.c.bf16 %v1678_v46, %v1678_v46 }
 0x6a1   : > { %v1387_v26 = vrot.slane %v1380_v22, %v4225_v50  ;;  %v1395_v27 = vrot.slane %v2576_v23, %v4225_v50  ;;  %v1403_v28 = vrot.slane %v1396_v24, %v4225_v50  ;;  %v1411_v29 = vrot.slane %v2577_v25, %v4225_v50 }
 0x6a3   : > { %v1412_v30 = vcombine.low %v1387_v26, %v1395_v27  ;;  %v1413_v31 = vcombine.high %v1387_v26, %v1395_v27  ;;  %v1428_v32 = vcombine.low %v1403_v28, %v1411_v29  ;;  %v1429_v33 = vcombine.high %v1403_v28, %v1411_v29 }
 0x6a5   : > { %v1420_v34 = vrot.slane %v1412_v30, %v4227_v56  ;;  %v1427_v36 = vrot.slane %v1413_v31, %v4227_v56  ;;  %v1436_v38 = vrot.slane %v1428_v32, %v4227_v56  ;;  %v1443_v39 = vrot.slane %v1429_v33, %v4227_v56  ;;  %v2970_v33 = vld [vmem:[#allocation17 + $0x8] sm:$0xff]  }
 0x6a7   : > { %v1444_v41 = vcombine.low %v1420_v34, %v1436_v38  ;;  %v1445_v42 = vcombine.high %v1420_v34, %v1436_v38  ;;  %v1446_v43 = vcombine.low %v1427_v36, %v1443_v39  ;;  %v1447_v44 = vcombine.high %v1427_v36, %v1443_v39 }
 0x6a9   : > { %v1448_v47 = vpack.c.bf16 %v1444_v41, %v1444_v41  ;;  %v1449_v51 = vpack.c.bf16 %v1445_v42, %v1445_v42  ;;  %v1450_v53 = vpack.c.bf16 %v1446_v43, %v1446_v43  ;;  %v1451_v54 = vpack.c.bf16 %v1447_v44, %v1447_v44 }
 0x6ab   : > { %v1690_v35 = vsel %vm1688_vm3, %v1448_v47, 0  ;;  %v1736_v52 = vsel %vm1688_vm3, %v1449_v51, 0  ;;  %v1782_v48 = vsel %vm1688_vm3, %v1450_v53, 0  ;;  %v1828_v49 = vsel %vm1688_vm3, %v1451_v54, 0 }
 0x6ac   : > { %2693 = vmatpush3.bf16.msra.mxu1 %v1690_v35  ;;  %2699 = vmatpush3.bf16.msra.mxu0 %v1736_v52 }
 0x6ad   : > { %2704 = vmatprep.subr.bf16.mxu1 %v3596_v9  ;;  %2710 = vmatprep.subr.bf16.mxu0 %v3596_v9 }
 0x6af   : > { %2695 = vmatmul.mubr.msk.bf16.vlgmr.msra.gmra.mrb[12].mxu1 %vm1452_vm2, %v1681_v55  ;;  %2701 = vmatmul.mubr.msk.bf16.vlgmr.msra.gmra.mrb[16].mxu0 %vm1452_vm2, %v1682_v57 }
 0x6b0   : > { %2705 = vmatpush3.bf16.msra.mxu1 %v1782_v48  ;;  %2711 = vmatpush3.bf16.msra.mxu0 %v1828_v49 }
 0x6b1   : > { %2706 = vmatprep.mubr.msk.bf16.mxu1 %vm3597_vm1, %v3596_v9  ;;  %2712 = vmatprep.mubr.msk.bf16.mxu0 %vm3597_vm1, %v3596_v9 }
 0x6b2   : > { %2716 = vmatprep.subr.bf16.mxu1 %v3596_v9  ;;  %2724 = vmatprep.subr.bf16.mxu0 %v3596_v9 }
 0x6c6   : > { %v1669_v58 = vpop.xlane.xlu0 %1668 }
 0x6c7   : > { %2991 = vrcp.f32 %v1669_v58  ;;  %v1672_v61 = vpop.xlane.xlu1 %1671 }
 0x6c8   : > { %2993 = vrcp.f32 %v1672_v61 }
 0x6d1   : > { %v2992_v62 = vpop.eup %2991 }
 0x6d2   : > { %v2994_v63 = vpop.eup %2993  ;;  %v1679_v1 = vmul.f32 %v2992_v62, %v4297_v59 }
 0x6d3   : > { %v1680_v2 = vmul.f32 %v2994_v63, %v4299_v60 }
 0x6d4   : > { %v1683_v3 = vpack.c.bf16 %v1679_v1, %v1679_v1 }
 0x6d5   : > { %v1684_v4 = vpack.c.bf16 %v1680_v2, %v1680_v2 }
 0x6d6   : > { %2707 = vmatmul.mubr.msk.bf16.vlgmr.msra.gmra.mrb[16].mxu1 %vm1452_vm2, %v1683_v3 }
 0x6d7   : > { %2713 = vmatmul.mubr.msk.bf16.vlgmr.msra.gmra.mrb[20].mxu0 %vm1452_vm2, %v1684_v4  ;;  %2720 = vmatprep.mubr.msk.bf16.mxu1 %vm3597_vm1, %v3596_v9  ;;  %v2588_v4 = vld [vmem:[#allocation19] ss:$0 sm:$0xff] }
 0x6d8   : > { %2728 = vmatprep.mubr.msk.bf16.mxu0 %vm3597_vm1, %v3596_v9  ;;  %2717 = vmatpush3.bf16.msra.mxu1 %v2969_v5 }
 0x6d9   : > { %2718 = vmatprep.subr.bf16.mxu1 %v3596_v9 }
 0x6dc   : > { %2719 = vmatpush3.bf16.msra.mxu1 %v2970_v33 }
 0x6dd   : > { %2732 = vmatprep.subr.bf16.mxu1 %v3596_v9 }
 0x782   : > { %v1726_v6 = vpop.f32.mrb[12].mxu1  ;;  %v1772_v59 = vpop.f32.mrb[16].mxu0 }
 0x783   : > { %v2696_v7 = vpop.f32.mrb[13].mxu1  ;;  %v2702_v60 = vpop.f32.mrb[17].mxu0 }
 0x784   : > { %v1729_v8 = vpop.f32.mrb[14].mxu1  ;;  %v1775_v10 = vpop.f32.mrb[18].mxu0 }
 0x785   : > { %v2697_v11 = vpop.f32.mrb[15].mxu1  ;;  %v2703_v12 = vpop.f32.mrb[19].mxu0 }
 0x7a9   : > { %v1818_v13 = vpop.f32.mrb[16].mxu1 }
 0x7aa   : > { %v1870_v14 = vcombine.low %v1726_v6, %v1818_v13  ;;  %v1871_v15 = vcombine.high %v1726_v6, %v1818_v13  ;;  %v1864_v16 = vpop.f32.mrb[20].mxu0  ;;  %v2708_v17 = vpop.f32.mrb[17].mxu1 }
 0x7ab   : > { %v1886_v18 = vcombine.low %v1772_v59, %v1864_v16  ;;  %v1887_v19 = vcombine.high %v1772_v59, %v1864_v16  ;;  %v2714_v20 = vpop.f32.mrb[21].mxu0  ;;  %v1821_v21 = vpop.f32.mrb[18].mxu1  ;;  %v2971_v16 = vld [vmem:[#allocation23] sm:$0xff]   ;;  %v2972_v17 = vld [vmem:[#allocation23 + $0x8] sm:$0xff]  }
 0x7ac   : > { %v1878_v22 = vrot.slane %v1870_v14, %v4225_v50  ;;  %v1885_v23 = vrot.slane %v1871_v15, %v4225_v50  ;;  %v1867_v24 = vpop.f32.mrb[22].mxu0  ;;  %v2709_v25 = vpop.f32.mrb[19].mxu1  ;;  %2725 = vmatpush3.bf16.msra.mxu0 %v2971_v16  ;;  %v2592_v21 = vld [vmem:[#allocation20] ss:$0 sm:$0xff] }
 0x7ad   : > { %v1894_v26 = vrot.slane %v1886_v18, %v4225_v50  ;;  %v1901_v27 = vrot.slane %v1887_v19, %v4225_v50  ;;  %v2715_v28 = vpop.f32.mrb[23].mxu0  ;;  %2726 = vmatprep.subr.bf16.mxu0 %v3596_v9 }
 0x7ae   : > { %v2974_v28 = vld [vmem:[#allocation26 + $0x8] sm:$0xff]  }
 0x7af   : > { %v1902_v29 = vcombine.low %v1878_v22, %v1894_v26  ;;  %v1903_v30 = vcombine.high %v1878_v22, %v1894_v26  ;;  %v1918_v31 = vcombine.low %v1885_v23, %v1901_v27  ;;  %v1919_v32 = vcombine.high %v1885_v23, %v1901_v27  ;;  %v2593_v23 = vld [vmem:[#allocation22] ss:$0 sm:$0xff]  ;;  %v2973_v27 = vld [vmem:[#allocation26] sm:$0xff]  }
 0x7b0   : > { %2727 = vmatpush3.bf16.msra.mxu0 %v2972_v17 }
 0x7b1   : > { %v1910_v34 = vrot.slane %v1902_v29, %v4227_v56  ;;  %v1917_v36 = vrot.slane %v1903_v30, %v4227_v56  ;;  %v1926_v37 = vrot.slane %v1918_v31, %v4227_v56  ;;  %v1933_v38 = vrot.slane %v1919_v32, %v4227_v56  ;;  %v2975_v29 = vld [vmem:[#allocation26 + $0x10] sm:$0xff]   ;;  %v2976_v30 = vld [vmem:[#allocation26 + $0x18] sm:$0xff]  }
 0x7b2   : > { %v2594_v31 = vld [vmem:[#allocation25] ss:$0 sm:$0xff] }
 0x7b3   : > { %v1938_v39 = vcombine.low %v1910_v34, %v1917_v36  ;;  %v2586_v40 = vcombine.high %v1910_v34, %v1917_v36  ;;  %v1954_v41 = vcombine.low %v1926_v37, %v1933_v38  ;;  %v2587_v42 = vcombine.high %v1926_v37, %v1933_v38 }
 0x7b5   : > { %v1945_v43 = vrot.slane %v1938_v39, %v4225_v50  ;;  %v1953_v44 = vrot.slane %v2586_v40, %v4225_v50  ;;  %v1961_v45 = vrot.slane %v1954_v41, %v4225_v50  ;;  %v1969_v46 = vrot.slane %v2587_v42, %v4225_v50 }
 0x7b7   : > { %v1971_v47 = vcombine.high %v1945_v43, %v1953_v44  ;;  %v1987_v51 = vcombine.high %v1961_v45, %v1969_v46  ;;  %v1970_v35 = vcombine.low %v1945_v43, %v1953_v44  ;;  %v1986_v52 = vcombine.low %v1961_v45, %v1969_v46 }
 0x7b9   : > { %v1985_v53 = vrot.slane %v1971_v47, %v4227_v56  ;;  %v2001_v54 = vrot.slane %v1987_v51, %v4227_v56  ;;  %v1978_v55 = vrot.slane %v1970_v35, %v4227_v56  ;;  %v1994_v57 = vrot.slane %v1986_v52, %v4227_v56  ;;  %v2598_v47 = vld [vmem:[#allocation28] ss:$0 sm:$0xff] }
 0x7bb   : > { %v2004_v48 = vcombine.low %v1985_v53, %v2001_v54  ;;  %v2003_v49 = vcombine.high %v1978_v55, %v1994_v57  ;;  %v2005_v58 = vcombine.high %v1985_v53, %v2001_v54  ;;  %v2002_v61 = vcombine.low %v1978_v55, %v1994_v57 }
 0x7bd   : > { %2011 = vrot.lane.b32.xlu1 %v2004_v48, %s3603_s22  ;;  %2007 = vrot.lane.b32.xlu0 %v2003_v49, %s3604_s19  ;;  %s3606_s22 = smov [#allocation29]  }
 0x7be   : > { %s3481_s19 = sshll.u32 %s3606_s22, 4  ;;  %s3482_s19 = int_to_ptr.vmem [resolvable:$false] %s3481_s19 }
 0x7bf   : > { %p3484_p6 = scmp.lt.s32.totalorder %s4388_s30, %s3482_s19 }
 0x7c1   : > { %2015 = vrot.lane.b32.xlu0 %v2005_v58, %s3605_s28  ;;  %s3483_s28 = scalar_lea.vmem %s3482_s19, 256 }
 0x7c2   : > { %p3485_p9 = scmp.lt.s32.totalorder %s3483_s28, %s3477_s24 }
 0x7c4   : > { %p3486_p4 = por %p3485_p9, %p3484_p6 }
 0x7c6   : > { %p3487_p1 = pnand %p3486_p4, %p3480_p7 }
 0x82f   : > { %v2008_v50 = vpop.permute.xlu0 %2007  ;;  %v2012_v62 = vpop.permute.xlu1 %2011 }
 0x830   : > { %v2018_v63 = vsel %vm1452_vm2, %v2002_v61, %v2008_v50 }
 0x831   : > { %v2020_v2 = vsel %vm2019_vm4, %v2018_v63, %v2012_v62 }
 0x833   : > { %v2016_v1 = vpop.permute.xlu0 %2015 }
 0x834   : > { %v2022_v3 = vsel %vm2021_vm5, %v2020_v2, %v2016_v1 }
 0x835   : > { %v2023_v56 = vpack.c.bf16 %v2022_v3, %v2022_v3 }
 0x837   : > { %2721 = vmatmul.mubr.msk.bf16.vlgmr.msra.gmra.mrb[20].mxu1 %vm780_vm0, %v2023_v56 }
 0x838   : > { %2740 = vmatprep.mubr.msk.bf16.mxu1 %vm3597_vm1, %v3596_v9  ;;  %2733 = vmatpush3.bf16.msra.mxu1 %v2973_v27 }
 0x839   : > { %2734 = vmatprep.subr.bf16.mxu1 %v3596_v9 }
 0x83c   : > { %2735 = vmatpush3.bf16.msra.mxu1 %v2974_v28 }
 0x83d   : > { %2736 = vmatprep.subr.bf16.mxu1 %v3596_v9 }
 0x840   : > { %2737 = vmatpush3.bf16.msra.mxu1 %v2975_v29 }
 0x841   : > { %2738 = vmatprep.subr.bf16.mxu1 %v3596_v9 }
 0x844   : > { %2739 = vmatpush3.bf16.msra.mxu1 %v2976_v30 }
 0x90a   : > { %v2084_v5 = vpop.f32.mrb[20].mxu1 }
 0x90b   : > { %v2085_v6 = vadd.f32 %v2588_v4, %v2084_v5  ;;  %v2722_v59 = vpop.f32.mrb[21].mxu1 }
 0x90c   : > { %v2087_v7 = vpop.f32.mrb[22].mxu1 }
 0x90d   : > { %v4368_v60 = vadd.f32 %v2085_v6, %v4190_v0  ;;  %v2723_v8 = vpop.f32.mrb[23].mxu1 }
 0x90f   : > { %v2093_v10 = vsel %vm780_vm0, %v4368_v60, 0.0 }
 0x910   : > { %2094 = vadd.xlane.f32.xlu1 %v2093_v10 }
 0x99d   : > { %v2095_v11 = vpop.xlane.xlu1 %2094 }
 0x99e   : > { %v2096_v12 = vmul.f32 0.03125, %v2095_v11 }
 0x9a0   : > { %v2097_v13 = vsub.f32 %v4368_v60, %v2096_v12 }
 0x9a2   : > { %v2098_v14 = vmul.f32 %v2097_v13, %v2097_v13 }
 0x9a4   : > { %v2099_v15 = vsel %vm780_vm0, %v2098_v14, 0.0 }
 0x9a5   : > { %2100 = vadd.xlane.f32.xlu0 %v2099_v15 }
 0xa32   : > { %v2101_v0 = vpop.xlane.xlu0 %2100 }
 0xa33   : > { %v2102_v18 = vmul.f32 0.03125, %v2101_v0 }
 0xa35   : > { %v2103_v19 = vadd.f32 1e-05, %v2102_v18 }
 0xa37   : > { %2995 = vrsqrt.f32 %v2103_v19 }
 0xa41   : > { %v2996_v20 = vpop.eup %2995 }
 0xa42   : > { %v2105_v22 = vmul.f32 %v2996_v20, %v2097_v13 }
 0xa44   : > { %v2112_v24 = vmul.f32 %v2592_v21, %v2105_v22 }
 0xa46   : > { %v2119_v25 = vadd.f32 %v2593_v23, %v2112_v24 }
 0xa48   : > { %v2120_v26 = vpack.c.bf16 %v2119_v25, %v2119_v25 }
 0xa4a   : > { %2729 = vmatmul.mubr.msk.bf16.vlgmr.msra.gmra.mrb[24].mxu0 %vm780_vm0, %v2120_v26 }
 0xb1d   : > { %v2181_v32 = vpop.f32.mrb[24].mxu0 }
 0xb1e   : > { %v2182_v33 = vadd.f32 %v2594_v31, %v2181_v32  ;;  %v2730_v34 = vpop.f32.mrb[25].mxu0 }
 0xb1f   : > { %v2184_v36 = vpop.f32.mrb[26].mxu0 }
 0xb20   : > { %v2188_v37 = vmul.f32 0.044715, %v2182_v33  ;;  %v2731_v38 = vpop.f32.mrb[27].mxu0  ;;  %v2187_v44 = vmul.f32 0.5, %v2182_v33 }
 0xb22   : > { %v2189_v39 = vmul.f32 %v2188_v37, %v2182_v33 }
 0xb24   : > { %v2190_v40 = vmul.f32 %v2189_v39, %v2182_v33 }
 0xb26   : > { %v2191_v41 = vadd.f32 %v2190_v40, %v2182_v33 }
 0xb28   : > { %v2192_v42 = vmul.f32 0.7978846, %v2191_v41 }
 0xb2a   : > { %2997 = vtanh.f32 %v2192_v42 }
 0xb34   : > { %v2998_v43 = vpop.eup %2997 }
 0xb35   : > { %v2194_v45 = vadd.f32 1.0, %v2998_v43 }
 0xb37   : > { %v2195_v46 = vmul.f32 %v2194_v45, %v2187_v44 }
 0xb39   : > { %v2196_v9 = vpack.c.bf16 %v2195_v46, %v2195_v46 }
 0xb3b   : > { %2741 = vmatmul.mubr.msk.bf16.vlgmr.msra.gmra.mrb[24].mxu1 %vm2236_vm6, %v2196_v9 }
 0xc0e   : > { %v2274_v51 = vpop.f32.mrb[24].mxu1 }
 0xc0f   : > { %v2275_v35 = vadd.f32 %v2598_v47, %v2274_v51  ;;  %v2742_v52 = vpop.f32.mrb[25].mxu1 }
 0xc10   : > { %v2277_v53 = vpop.f32.mrb[26].mxu1 }
 0xc11   : > { %v2280_v54 = vadd.f32 %v2275_v35, %v4368_v60  ;;  %v2743_v55 = vpop.f32.mrb[27].mxu1 }
 0xc13   : > { %2281 = vst.msk [vmem:[%s775_s26] sm:$0xff] %vm780_vm0, %v2280_v54 }
 0xc14   : > { %3490 = shalt.err (!%p3487_p1)
}
 0xc15   : > { %s3491_s3 = scalar_lea.hbm %s4386_s21, 128  ;;  %s3495_s0 = scalar_lea.hbm %s4513_s23, 256 }
 0xc16   : > { %p3492_p13 = scmp.ne.s32.totalorder %s4386_s21, %s3491_s3  ;;  %p3496_p3 = scmp.lt.u32.totalorder %s4386_s21, %s4513_s23 }
 0xc17   : > { %p3497_p10 = scmp.lt.u32.totalorder %s3495_s0, %s3491_s3  ;;  %p3499_p12 = scmp.lt.u32.totalorder %s3491_s3, %s4386_s21 }
 0xc18   : > { %p3493_p0 = pnand %p3492_p13, %p4514_p8 }
 0xc19   : > { %p3498_p11 = por %p3497_p10, %p3496_p3 }
 0xc1a   : > { %p3494_p2 = pneg %p3493_p0 }
 0xc1b   : > { %p3500_p5 = por %p3499_p12, %p3498_p11 }
 0xc1d   : > { %p3501_p7 = pnand %p3500_p5, %p3494_p2 }
 0xc1f   : > { %3504 = shalt.err (!%p3501_p7)
}
 0xc20   : > { %2810 = dma.vmem_to_hbm [thread:$0]  (%p4514_p8), %s4388_s30, 128, %s4386_s21, %s2283_s18  }
 0xc21 PF: > { %s4515_s24 = sld [smem:[#allocation40_spill]]  ;;  %s4516_s19 = sld [smem:[#allocation43_spill]] }
 0xc22   : > { %p4517_p6 = scmp.ne.s32.totalorder %s4490_s25, 0 }
 0xc27   : > { %s2308_s28 = sand.u32 1, %s4515_s24   ;;  %p4518_p9 = scmp.ge.s32.totalorder %s4516_s19, 2 }
 0xc28   : > { %s2309_s2 = scalar_lea.sflag [#allocation4], %s2308_s28 }
 0xc29   : > { %p2866_p4 = pnand %p4518_p9, %p4517_p6 }
 0xc2b   : > { %3558 = dma.done.wait (!%p2866_p4), %s2309_s2, 128  }
 0xc2c   : > { %3560 = vsyncadd (!%p2866_p4), %s2309_s2, 4294967168  ;;  %s4519_s24 = sld [smem:[#allocation41_spill]]  ;;  %s4520_s25 = sld [smem:[#allocation42_spill]] }
 0xc2d   : > { %p38_p1 = scmp.ge.s32.totalorder %s4072_s27, 4   ;;  %s4521_s26 = smov %s4083_s17 }
 0xc2f   :  { %40 = sbr.rel (!%p38_p1) target bundleno = 19 (0x13), region = 197 }
 0xc36   :  { %2314 = vsyncpa [#allocation3], 1 }
 0xc37   :  { %2316 = vsyncpa [#allocation3 + $0x1], 1 }
 0xc38   :  { %2317 = vsyncpa [#allocation6], 1 }
 0xc39   :  { %2318 = vsyncpa [#allocation9], 1 }
 0xc3a   :  { %2319 = vsyncpa [#allocation12], 1 }
 0xc3b   :  { %2320 = vsyncpa [#allocation15], 1 }
 0xc3c   :  { %2321 = vsyncpa [#allocation18], 1 }
 0xc3d   :  { %2322 = vsyncpa [#allocation21], 1 }
 0xc3e   :  { %2323 = vsyncpa [#allocation24], 1 }
 0xc3f   :  { %2324 = vsyncpa [#allocation27], 1 }
 0xc40   :  { %2325 = vsyncpa [#allocation4], 1 }
 0xc41   :  { %2327 = vsyncpa [#allocation4 + $0x1], 1 }

</bundles_post_ra>
